<compile_context>
chip_gen: v7x
topology: tpu7x:2x2x1
jax: 0.10.0
libtpu: 0.0.40
codegen_flags: <defaults>
</compile_context>

<pallas_src>
import functools

import jax
import jax.numpy as jnp
from jax.experimental import pallas as pl
from jax.experimental.pallas import tpu as pltpu

NUM_CLASSES = 10
IN_CHANNELS = 3
LEAKY_SLOPE = 0.1
BN_EPS = 1e-5

yolo_architecture = [
    (32, 3, 1), (64, 3, 2), ['residual', 1], (128, 3, 2), ['residual', 2],
    (256, 3, 2), ['residualYolo', 8], (512, 3, 2), ['residualYolo', 8],
    (1024, 3, 2), ['residual', 4], ['yolo', 1024], ['yolo', 512], ['yolo', 256],
]


def _round_up(x, m):
    return (x + m - 1) // m * m


def _vmem_capacity_bytes():
    try:
        info = pltpu.get_tpu_info()
        cap = int(getattr(info, "vmem_capacity_bytes", 0))
        if cap > 0:
            return cap
    except Exception:
        pass
    return 64 * 1024 * 1024  # conservative default (v7x per-TensorCore VMEM)


_VMEM_CAP = _vmem_capacity_bytes()
_TILE_BUDGET = int(_VMEM_CAP * 0.60)   # budget for double-buffered tile bytes/step
_VMEM_LIMIT = int(_VMEM_CAP * 0.85)    # scoped-vmem limit handed to Mosaic
TM_MAX = 2048 if _VMEM_CAP >= 100 * 1024 * 1024 else 1024   # v5e/v6e vs v7x


# ---------------------------------------------------------------------------
# Pallas kernel: tiled bf16 matmul (f32 acc) + bias (+ LeakyReLU) (+ residual)
# ---------------------------------------------------------------------------
def _conv_mm_kernel(p_ref, w_ref, b_ref, *rest, use_act, has_res):
    if has_res:
        r_ref, o_ref, acc_ref = rest
    else:
        o_ref, acc_ref = rest
    k = pl.program_id(2)

    @pl.when(k == 0)
    def _():
        acc_ref[...] = jnp.zeros_like(acc_ref)

    acc_ref[...] += jnp.dot(p_ref[...], w_ref[...],
                            preferred_element_type=jnp.float32)

    @pl.when(k == pl.num_programs(2) - 1)
    def _():
        y = acc_ref[...] + b_ref[...]                 # folded BN bias / conv bias
        if use_act:
            y = jnp.where(y > 0, y, LEAKY_SLOPE * y)  # LeakyReLU(0.1)
        if has_res:
            y = y + rest[0][...].astype(jnp.float32)  # fused residual add
        o_ref[...] = y.astype(o_ref.dtype)


# ---------------------------------------------------------------------------
# Tile selection: grow tk first (collapse the 'arbitrary' k axis), then tn
# (single n-block -> patches read once), then tm, under a per-generation
# double-buffered VMEM budget.
# ---------------------------------------------------------------------------
def _tile_bytes(tm, tk, tn, out_bytes, has_res):
    b = 2 * tm * tk * 2            # im2col patches (bf16, double-buffered)
    b += 2 * tk * tn * 2           # folded weights (bf16)
    b += 2 * tm * tn * out_bytes   # output tile
    b += tm * tn * 4               # f32 accumulator scratch
    b += 2 * tn * 4                # bias
    if has_res:
        b += 2 * tm * tn * 2       # fused residual tile (bf16)
    return b


def _divisor_tiles(padded):
    # divisors of `padded` that are multiples of 128, descending
    return [d for d in range(padded, 127, -128) if padded % d == 0]


def _select_tiles(M, Kp, Np, out_bytes, has_res, budget):
    tm_seed = min(_round_up(M, 16), 256)

    # 1) tk: cover full K when it fits -> no accumulator revisits / pl.when phases.
    tk = 128
    for d in _divisor_tiles(Kp):
        if _tile_bytes(tm_seed, d, 128, out_bytes, has_res) <= budget:
            tk = d
            break

    # 2) tn: single n-block means the (9x-inflated) patch buffer is DMA'd once.
    tn = 128
    for d in _divisor_tiles(Np):
        if _tile_bytes(tm_seed, tk, d, out_bytes, has_res) <= budget:
            tn = d
            break

    # 3) tm: fewer m-blocks -> weights fetched fewer times.
    tm_cap = TM_MAX
    while tm_cap > 16 and _tile_bytes(tm_cap, tk, tn, out_bytes, has_res) > budget:
        tm_cap //= 2
    if M <= tm_cap:
        tm = _round_up(M, 16)
    else:
        nblk = -(-M // tm_cap)                      # balanced blocks, less M padding
        tm = _round_up(-(-M // nblk), 16)

    # Keep both megacore TensorCores busy when the layer would otherwise be a
    # single (1,1,k) grid: split the n axis in two.
    if M <= tm and tn == Np and Np >= 256 and (Np // 2) % 128 == 0:
        tn = Np // 2
    return tm, tk, tn


def matmul_bias_act(patches, w, bias, n_real, use_act, residual=None):
    """out[m, n] = act(sum_k patches[m, k] * w[k, n] + bias[n]) (+ residual)."""
    M, Kp = patches.shape
    Kp2, Np = w.shape
    assert Kp == Kp2

    out_dtype = jnp.bfloat16 if use_act else jnp.float32
    out_bytes = 2 if use_act else 4
    has_res = residual is not None

    tm, tk, tn = _select_tiles(M, Kp, Np, out_bytes, has_res, _TILE_BUDGET)
    Mp = _round_up(M, tm)

    p = patches.astype(jnp.bfloat16)
    if Mp != M:
        p = jnp.pad(p, ((0, Mp - M), (0, 0)))

    in_specs = [
        pl.BlockSpec((tm, tk), lambda m, n, k: (m, k)),  # im2col patches
        pl.BlockSpec((tk, tn), lambda m, n, k: (k, n)),  # folded weights
        pl.BlockSpec((1, tn), lambda m, n, k: (0, n)),   # bias (re-DMA only on n change)
    ]
    args = [p, w, bias]
    if has_res:
        r = residual.astype(jnp.bfloat16)
        rM, rN = r.shape
        if rM != Mp or rN != Np:
            r = jnp.pad(r, ((0, Mp - rM), (0, Np - rN)))
        in_specs.append(pl.BlockSpec((tm, tn), lambda m, n, k: (m, n)))
        args.append(r)

    grid = (Mp // tm, Np // tn, Kp // tk)

    out = pl.pallas_call(
        functools.partial(_conv_mm_kernel, use_act=use_act, has_res=has_res),
        out_shape=jax.ShapeDtypeStruct((Mp, Np), out_dtype),
        grid_spec=pltpu.PrefetchScalarGridSpec(
            num_scalar_prefetch=0,
            grid=grid,
            in_specs=in_specs,
            out_specs=pl.BlockSpec((tm, tn), lambda m, n, k: (m, n)),
            scratch_shapes=[pltpu.VMEM((tm, tn), jnp.float32)],
        ),
        compiler_params=pltpu.CompilerParams(
            dimension_semantics=("parallel", "parallel", "arbitrary"),
            vmem_limit_bytes=_VMEM_LIMIT),
    )(*args)
    return out[:M, :n_real]


# ---------------------------------------------------------------------------
# Conv layer = im2col (glue, K padded inside the concat) + fused Pallas matmul
# ---------------------------------------------------------------------------
def _im2col(x, ksize, stride, pad, k_total):
    # x: (B, H, W, C); returns (B*Ho*Wo, k_total) with K zero-padded in place.
    B, H, W, C = x.shape
    if pad:
        x = jnp.pad(x, ((0, 0), (pad, pad), (pad, pad), (0, 0)))
    Ho = (H + 2 * pad - ksize) // stride + 1
    Wo = (W + 2 * pad - ksize) // stride + 1
    cols = []
    for i in range(ksize):
        for j in range(ksize):
            cols.append(x[:, i:i + stride * Ho:stride, j:j + stride * Wo:stride, :])
    k_pad = k_total - ksize * ksize * C
    if k_pad:
        cols.append(jnp.zeros((B, Ho, Wo, k_pad), x.dtype))
    patches = cols[0] if len(cols) == 1 else jnp.concatenate(cols, axis=-1)
    return patches.reshape(B * Ho * Wo, k_total), (B, Ho, Wo)


def conv_layer(x, p, residual=None):
    kp = p['w'].shape[0]
    patches, (B, Ho, Wo) = _im2col(x, p['ksize'], p['stride'], p['pad'], kp)
    if residual is not None:
        residual = residual.reshape(B * Ho * Wo, residual.shape[-1])
    y = matmul_bias_act(patches, p['w'], p['bias'], p['cout'], p['act'], residual)
    return y.reshape(B, Ho, Wo, -1)


# ---------------------------------------------------------------------------
# Deterministic parameter construction (mirrors yolov3._create_layers)
# ---------------------------------------------------------------------------
class _KeyGen:
    def __init__(self, key):
        self.key = key
        self.cnt = 0

    def __call__(self):
        self.cnt += 1
        return jax.random.fold_in(self.key, self.cnt)


def make_conv(kg, cin, cout, ksize, bn_act=True, stride=1):
    w = jax.random.normal(kg(), (cout, cin, ksize, ksize), jnp.float32)
    w = w / jnp.sqrt(jnp.float32(cin * ksize * ksize))
    if bn_act:
        gamma = jnp.ones((cout,), jnp.float32)
        beta = jnp.zeros((cout,), jnp.float32)
        running_mean = jnp.zeros((cout,), jnp.float32)
        running_var = jnp.ones((cout,), jnp.float32)
        scale = gamma / jnp.sqrt(running_var + BN_EPS)
        bias = beta - running_mean * scale
    else:
        scale = jnp.ones((cout,), jnp.float32)
        bias = 0.01 * jax.random.normal(kg(), (cout,), jnp.float32)  # conv bias
    # Fold the BN scale (or identity) into the conv weights on the host.
    w = w * scale[:, None, None, None]
    K = ksize * ksize * cin
    Kp = _round_up(K, 128)
    Np = _round_up(cout, 128)
    # (Cout, Cin, Kh, Kw) -> (Kh*Kw*Cin, Cout) to match im2col tap ordering,
    # pre-padded to lane multiples so no runtime pad pass is needed.
    w_mm = jnp.transpose(w, (2, 3, 1, 0)).reshape(K, cout)
    w_mm = jnp.pad(w_mm, ((0, Kp - K), (0, Np - cout))).astype(jnp.bfloat16)
    bias_p = jnp.pad(bias, (0, Np - cout)).reshape(1, Np).astype(jnp.float32)
    return dict(w=w_mm, bias=bias_p, cout=cout, ksize=ksize, stride=stride,
                pad=1 if ksize == 3 else 0, act=bn_act)


def make_convblock(kg, channels, use_residual=True, num_repeats=1):
    layers = [(make_conv(kg, channels, channels // 2, 1),
               make_conv(kg, channels // 2, channels, 3))
              for _ in range(num_repeats)]
    return dict(layers=layers, use_residual=use_residual)


def make_convblockyolo(kg, channels, num_repeats=1):
    layers = [(make_conv(kg, channels, channels // 2, 1),
               make_conv(kg, channels // 2, channels, 3))
              for _ in range(num_repeats)]
    return dict(layers=layers)


def make_detection(kg, channels, num_classes):
    return dict(
        convblock=make_convblock(kg, channels, use_residual=False, num_repeats=2),
        penult=make_conv(kg, channels, channels // 2, 1),
        ult=make_conv(kg, channels // 2, channels, 3),
        pred=make_conv(kg, channels, 3 * (4 + 1 + num_classes), 1, bn_act=False),
    )


def create_layers(key, num_classes=NUM_CLASSES, in_channels=IN_CHANNELS):
    kg = _KeyGen(key)
    layers = []
    cin = in_channels
    num_detection = 1
    for module in yolo_architecture:
        if isinstance(module, tuple):
            # (no 'linear' entries in this architecture -> bn_act=True)
            layers.append(('conv', make_conv(kg, cin, module[0], module[1],
                                             bn_act=True, stride=module[2])))
            cin = module[0]
        elif module[0] == 'residual':
            layers.append(('convblock', make_convblock(kg, cin, True, module[1])))
        elif module[0] == 'residualYolo':
            layers.append(('convblockyolo', make_convblockyolo(kg, cin, module[1])))
        elif module[0] == 'yolo':
            c = module[1]
            layers.append(('detection', make_detection(kg, c, num_classes)))
            if num_detection != 3:
                layers.append(('conv', make_conv(kg, c // 2, c // 4, 1)))
                layers.append(('upsample', None))
            num_detection += 1
    return layers


# ---------------------------------------------------------------------------
# Forward pass (mirrors the PyTorch module structure)
# ---------------------------------------------------------------------------
def convblock_forward(x, blk):
    for c1, c2 in blk['layers']:
        h = conv_layer(x, c1)
        if blk['use_residual']:
            x = conv_layer(h, c2, residual=x)   # residual fused into the epilogue
        else:
            x = conv_layer(h, c2)
    return x


def convblockyolo_forward(x, blk):
    feat_map = None
    for idx, (c1, c2) in enumerate(blk['layers']):
        h = conv_layer(x, c1)
        if idx == 2:                # torch's num_layer == 5 split: save feat map
            feat_map = h
        x = conv_layer(h, c2, residual=x)       # residual fused into the epilogue
    return x, feat_map


def detection_forward(x, blk):
    x = convblock_forward(x, blk['convblock'])
    feat = conv_layer(x, blk['penult'])
    x = conv_layer(feat, blk['ult'])
    x = conv_layer(x, blk['pred'])
    B, H, W, _ = x.shape
    # torch permutes NCHW->NHWC then reshapes; our layout is already NHWC.
    return x.reshape(B, H, W, 3, -1), feat


def upsample2(x):  # nn.Upsample(scale_factor=2), mode='nearest'
    return jnp.repeat(jnp.repeat(x, 2, axis=1), 2, axis=2)


def yolov3_forward(x_nchw, layers):
    # NCHW -> NHWC; activations flow in bf16 (f32 accumulation inside the kernel).
    x = jnp.transpose(x_nchw, (0, 2, 3, 1)).astype(jnp.bfloat16)
    num_detection = 0
    feat_maps = []
    detections = []
    for tag, p in layers:
        if tag == 'conv':
            x = conv_layer(x, p)
        elif tag == 'convblock':
            x = convblock_forward(x, p)
        elif tag == 'convblockyolo':
            x, fm = convblockyolo_forward(x, p)
            feat_maps.append(fm)
        elif tag == 'detection':
            det, fm = detection_forward(x, p)
            detections.append(det)
            x = fm
            num_detection += 1
        elif tag == 'upsample':
            x = upsample2(x)
            # matches the spec module: cat((feat_maps[-num_detection], x), dim=1)
            x = jnp.concatenate([feat_maps[-num_detection], x], axis=-1)
    return detections


# ---------------------------------------------------------------------------
if __name__ == "__main__":
    key = jax.random.PRNGKey(0)
    pkey, xkey = jax.random.split(key)

    layers = create_layers(pkey)

    # Smallest valid spatial size: 5 stride-2 convs -> multiple of 32.
    x = jax.random.normal(xkey, (2, IN_CHANNELS, 32, 32), jnp.float32)  # NCHW

    detections = yolov3_forward(x, layers)
    detections = jax.block_until_ready(detections)

    expected = [(2, 1, 1, 3, 4 + 1 + NUM_CLASSES),
                (2, 2, 2, 3, 4 + 1 + NUM_CLASSES),
                (2, 4, 4, 3, 4 + 1 + NUM_CLASSES)]
    got = [tuple(d.shape) for d in detections]
    assert got == expected, f"unexpected detection shapes: {got}"
    assert all(bool(jnp.all(jnp.isfinite(d.astype(jnp.float32)))) for d in detections)

    print("KERNEL_OK")
</pallas_src>

<mosaic_0001>
module attributes {stable_mosaic.version = 11 : i64} {
  func.func @_conv_mm_kernel(%arg0: i32, %arg1: i32, %arg2: i32, %arg3: memref<1024x128xbf16, #tpu.memory_space<vmem>>, %arg4: memref<128x128xbf16, #tpu.memory_space<vmem>>, %arg5: memref<1x128xf32, #tpu.memory_space<vmem>>, %arg6: memref<1024x128xbf16, #tpu.memory_space<vmem>>, %arg7: memref<1024x128xf32, #tpu.memory_space<vmem>>) attributes {dimension_semantics = [#tpu.dimension_semantics<parallel>, #tpu.dimension_semantics<parallel>, #tpu.dimension_semantics<arbitrary>], iteration_bounds = array<i64: 2, 1, 1>, scalar_prefetch = 0 : i64, scratch_operands = 1 : i64, tpu.core_type = #tpu.core_type<tc>, window_params = [{transform_indices = @transform_0, window_bounds = array<i64: 1024, 128>}, {transform_indices = @transform_1, window_bounds = array<i64: 128, 128>}, {transform_indices = @transform_2, window_bounds = array<i64: 1, 128>}, {transform_indices = @transform_3, window_bounds = array<i64: 1024, 128>}]} {
    %c0_i32 = arith.constant 0 : i32
    %0 = arith.cmpi eq, %arg2, %c0_i32 : i32
    %1 = arith.extui %0 : i1 to i32
    %c0_i32_0 = arith.constant 0 : i32
    %2 = arith.cmpi ne, %1, %c0_i32_0 : i32
    scf.if %2 {
      %cst_10 = arith.constant 0.000000e+00 : f32
      %12 = vector.broadcast %cst_10 : f32 to vector<1024x128xf32>
      %c0_11 = arith.constant 0 : index
      %c0_12 = arith.constant 0 : index
      %13 = vector.load %arg7[%c0_11, %c0_12] : memref<1024x128xf32, #tpu.memory_space<vmem>>, vector<1024x128xf32>
      tpu.vector_store %arg7[%c0_11, %c0_12], %12 {strides = array<i32>} : memref<1024x128xf32, #tpu.memory_space<vmem>>, vector<1024x128xf32>,
    } else {
    }
    %c0 = arith.constant 0 : index
    %c0_1 = arith.constant 0 : index
    %3 = vector.load %arg7[%c0, %c0_1] : memref<1024x128xf32, #tpu.memory_space<vmem>>, vector<1024x128xf32>
    %c0_2 = arith.constant 0 : index
    %c0_3 = arith.constant 0 : index
    %4 = vector.load %arg3[%c0_2, %c0_3] : memref<1024x128xbf16, #tpu.memory_space<vmem>>, vector<1024x128xbf16>
    %c0_4 = arith.constant 0 : index
    %c0_5 = arith.constant 0 : index
    %5 = vector.load %arg4[%c0_4, %c0_5] : memref<128x128xbf16, #tpu.memory_space<vmem>>, vector<128x128xbf16>
    %cst = arith.constant dense<0.000000e+00> : vector<1024x128xf32>
    %6 = tpu.matmul %4, %5, %cst {dimension_numbers = #tpu.dot_dimension_numbers<[1], [0], [0], [1], [0, 0, 1, 1], [], []>} : vector<1024x128xbf16>, vector<128x128xbf16>, vector<1024x128xf32> -> vector<1024x128xf32>
    %7 = arith.addf %3, %6 : vector<1024x128xf32>
    %c0_6 = arith.constant 0 : index
    %c0_7 = arith.constant 0 : index
    %8 = vector.load %arg7[%c0_6, %c0_7] : memref<1024x128xf32, #tpu.memory_space<vmem>>, vector<1024x128xf32>
    tpu.vector_store %arg7[%c0_6, %c0_7], %7 {strides = array<i32>} : memref<1024x128xf32, #tpu.memory_space<vmem>>, vector<1024x128xf32>,
    %c0_i32_8 = arith.constant 0 : i32
    %9 = arith.cmpi eq, %arg2, %c0_i32_8 : i32
    %10 = arith.extui %9 : i1 to i32
    %c0_i32_9 = arith.constant 0 : i32
    %11 = arith.cmpi ne, %10, %c0_i32_9 : i32
    scf.if %11 {
      %c0_10 = arith.constant 0 : index
      %c0_11 = arith.constant 0 : index
      %12 = vector.load %arg7[%c0_10, %c0_11] : memref<1024x128xf32, #tpu.memory_space<vmem>>, vector<1024x128xf32>
      %c0_12 = arith.constant 0 : index
      %c0_13 = arith.constant 0 : index
      %13 = vector.load %arg5[%c0_12, %c0_13] : memref<1x128xf32, #tpu.memory_space<vmem>>, vector<1x128xf32>
      %14 = vector.broadcast %13 : vector<1x128xf32> to vector<1024x128xf32>
      %15 = arith.addf %12, %14 : vector<1024x128xf32>
      %cst_14 = arith.constant 0.000000e+00 : f32
      %16 = vector.broadcast %cst_14 : f32 to vector<1024x128xf32>
      %17 = arith.cmpf ogt, %15, %16 : vector<1024x128xf32>
      %cst_15 = arith.constant 1.000000e-01 : f32
      %18 = vector.broadcast %cst_15 : f32 to vector<1024x128xf32>
      %19 = arith.mulf %18, %15 : vector<1024x128xf32>
      %20 = arith.select %17, %15, %19 : vector<1024x128xi1>, vector<1024x128xf32>
      %21 = arith.truncf %20 : vector<1024x128xf32> to vector<1024x128xbf16>
      %c0_16 = arith.constant 0 : index
      %c0_17 = arith.constant 0 : index
      %22 = vector.load %arg6[%c0_16, %c0_17] : memref<1024x128xbf16, #tpu.memory_space<vmem>>, vector<1024x128xbf16>
      tpu.vector_store %arg6[%c0_16, %c0_17], %21 {strides = array<i32>} : memref<1024x128xbf16, #tpu.memory_space<vmem>>, vector<1024x128xbf16>,
    } else {
    }
    return
  }
  func.func @transform_0(%arg0: i32, %arg1: i32, %arg2: i32) -> (i32, i32) {
    %c0_i32 = arith.constant 0 : i32
    return %arg0, %arg2 : i32, i32
  }
  func.func @transform_1(%arg0: i32, %arg1: i32, %arg2: i32) -> (i32, i32) {
    %c0_i32 = arith.constant 0 : i32
    return %arg2, %arg1 : i32, i32
  }
  func.func @transform_2(%arg0: i32, %arg1: i32, %arg2: i32) -> (i32, i32) {
    %c0_i32 = arith.constant 0 : i32
    %c0_i32_0 = arith.constant 0 : i32
    return %c0_i32, %arg1 : i32, i32
  }
  func.func @transform_3(%arg0: i32, %arg1: i32, %arg2: i32) -> (i32, i32) {
    %c0_i32 = arith.constant 0 : i32
    return %arg0, %arg1 : i32, i32
  }
}

</mosaic_0001>

<bundles_post_ra>
// kernel: tpu_custom_call.1
= control target key start
LH: loop header
LB: loop body
LE: loop exit
PB: predicated region body
PF: predicated region fallthrough
CT: control target
= control target key end

     0   :  { %8 = vsyncpa [#allocation4], 0  ;;  %s5236_s0 = inlined_call_operand.hbm [shape: bf16[2048,128], index: 0, kind: input, shape index: {}]   ;;  %s5237_s1 = inlined_call_operand.hbm [shape: bf16[128,128], index: 1, kind: input, shape index: {}]   ;;  %s5238_s2 = inlined_call_operand.vmem [shape: f32[1,128], index: 2, kind: input, shape index: {}]   ;;  %s5239_s3 = inlined_call_operand.hbm [shape: bf16[2048,128], index: 3, kind: output, shape index: {}]  }
   0x1   :  { %10 = vsyncpa [#allocation4 + $0x1], 0 }
   0x2   :  { %11 = vsyncpa [#allocation7], 0 }
   0x3   :  { %12 = vsyncpa [#allocation5], 0 }
   0x4   :  { %14 = vsyncpa [#allocation5 + $0x1], 0  ;;  %s4600_s12 = smov 0   ;;  %s4602_s13 = smov 0  }
   0x5   :  { %s4604_s14 = smov 0   ;;  %s4606_s15 = smov 0  }
   0x6   :  { %s4608_s16 = smov 0   ;;  %s4610_s17 = smov 0  }
   0x7 LB: > { %s3313_s18 = sadd.s32 4294967295, %s4571_s17   ;;  %s3314_s19 = sadd.s32 4294967294, %s4571_s17   ;;  %s4571_s17 = sphi %s4610_s17, %s20_s17   ;;  %s4567_s16 = sphi %s4608_s16, %s5263_s16   ;;  %s4563_s15 = sphi %s4606_s15, %s5262_s15   ;;  %s4559_s14 = sphi %s4604_s14, %s5261_s14   ;;  %s4555_s13 = sphi %s4602_s13, %s5260_s13   ;;  %s4551_s12 = sphi %s4600_s12, %s5259_s12  }
   0x8   : > { %p61_p0 = scmp.ne.s32.totalorder %s4555_s13, %s4551_s12  ;;  %p4634_p1 = scmp.eq.s32.totalorder %s3313_s18, 0 }
   0x9   : > { %p4638_p2 = scmp.eq.s32.totalorder %s3313_s18, 1  ;;  %p147_p3 = scmp.eq.s32.totalorder %s3314_s19, 1 }
   0xa   : > { %s5244_s20 = scalar_select %p4634_p1, 1, 0 }
   0xb   : > { %s5245_s21 = scalar_select %p4638_p2, 1, 0 }
   0xc   : > { %p4644_p4 = por %p4634_p1, %p61_p0  ;;  %p3315_p5 = scmp.ge.s32.totalorder %s4571_s17, 1 }
   0xd   : > { %p4649_p6 = por %p147_p3, %p61_p0  ;;  %p154_p7 = scmp.lt.s32.totalorder %s4571_s17, 3 }
   0xe   : > { %s5246_s22 = scalar_select %p4644_p4, 1, 0 }
   0xf   : > { %s5247_s23 = scalar_select %p4649_p6, 1, 0 }
  0x10   : > { %p4654_p8 = pnand %p3315_p5, %p154_p7  ;;  %s4573_s25 = smov [#allocation6]  }
  0x11   : > { %s170_s26 = sshll.u32 %s4573_s25, 4  ;;  %s39_s28 = sadd.s32 1, %s4567_s16  ;;  %s171_s26 = int_to_ptr.vmem [resolvable:$true] %s170_s26 }
  0x12   : > { %s5248_s24 = scalar_select %p4654_p8, 1, 0 }
  0x13   : > { %p4285_p9 = pneg %p4654_p8  ;;  %s4427_s4 = scalar_lea.hbm %s5237_s1, 1024 }
  0x14   : > { %p4428_p12 = scmp.ne.s32.totalorder %s5237_s1, %s4427_s4  ;;  %p4434_p5 = scmp.lt.u32.totalorder %s4427_s4, %s5237_s1 }
  0x15   : > { %p4663_p11 = pnand %p4285_p9, %p4634_p1 }
  0x17   : > { %p4429_p13 = pneg %p4663_p11 }
  0x19   : > { %p4430_p0 = pnand %p4429_p13, %p4428_p12 }
  0x1b   : > { %p4431_p3 = pneg %p4430_p0 }
  0x1d   : > { %p4436_p7 = pnand %p4434_p5, %p4431_p3 }
  0x1f   : > { %4439 = shalt.err (!%p4436_p7)
}
  0x20   : > { %s4440_s9 = scalar_lea.vmem %s171_s26, 1024  ;;  %p4448_p1 = scmp.lt.s32.totalorder %s171_s26, %s171_s26 }
  0x21   : > { %p4441_p9 = scmp.ne.s32.totalorder %s171_s26, %s4440_s9  ;;  %p4449_p4 = scmp.lt.s32.totalorder %s4440_s9, %s4440_s9 }
  0x23   : > { %p4443_p10 = pnand %p4441_p9, %p4429_p13  ;;  %p4450_p8 = por %p4449_p4, %p4448_p1 }
  0x25   : > { %p4444_p6 = pneg %p4443_p10 }
  0x27   : > { %p4451_p2 = pnand %p4450_p8, %p4444_p6 }
  0x29   : > { %4454 = shalt.err (!%p4451_p2)
}
  0x2a   : > { %s4574_s10 = smov 64   ;;  %s4575_s11 = smov 4  }
  0x2b   : > { %4288 = dma.hbm_to_vmem [thread:$0]  (!%p4663_p11), %s5237_s1, 1024, %s171_s26, [#allocation7], %s4574_s10, %s4574_s10, %s4575_s11  }
  0x2c   : > { %p41_p1 = scmp.ge.s32.totalorder %s39_s28, 2  ;;  %s48_s25 = sadd.s32 1, %s4559_s14 }
  0x2d   : > { %p55_p2 = scmp.ne.s32.totalorder %s4559_s14, %s4555_s13  ;;  %p56_p4 = scmp.eq.s32.totalorder %s4571_s17, 0 }
  0x2e   : > { %s5265_s28 = smov (%p41_p1, %s39_s28), 0  ;;  %p5251_p8 = scmp.ne.s32.totalorder %s5245_s21, 0 }
  0x2f   : > { %p4693_p6 = por %p56_p4, %p55_p2  ;;  %s43_s30 = ssub.s32 %s4567_s16, %s5265_s28 }
  0x30   : > { %p4699_p10 = por %p5251_p8, %p55_p2  ;;  %p4298_p12 = scmp.lt.s32.totalorder %s4571_s17, 2 }
  0x31   : > { %p46_p11 = scmp.eq.s32.totalorder %s43_s30, 0  ;;  %s190_s26 = sand.u32 1, %s4559_s14  }
  0x32   : > { %s3319_s4 = sshll.u32 %s190_s26, 9  ;;  %s3532_s6 = sshll.u32 %s4567_s16, 13 }
  0x33   : > { %s4708_s5 = scalar_select %p46_p11, %s4559_s14, %s48_s25  }
  0x34   : > { %s4714_s9 = scalar_lea.hbm %s5236_s0, %s3532_s6  ;;  %s194_s21 = scalar_lea.vmem [#allocation3], %s3319_s4 }
  0x35   : > { %s202_s18 = sshll.u32 %s194_s21, 4  ;;  %p4720_p13 = pnand %p4298_p12, %p4693_p6  ;;  %s4716_s18 = int_to_ptr.vmem [resolvable:$true] %s202_s18 }
  0x36   : > { %s4724_s25 = scalar_lea.sflag [#allocation4], %s190_s26  ;;  %s4455_s30 = scalar_lea.hbm %s4714_s9, 8192 }
  0x37   : > { %p4456_p0 = scmp.ne.s32.totalorder %s4714_s9, %s4455_s30  ;;  %p4457_p3 = pneg %p4720_p13 }
  0x38   : > { %s4460_s29 = scalar_lea.hbm %s5236_s0, 16384  ;;  %p4461_p9 = scmp.lt.u32.totalorder %s4714_s9, %s5236_s0 }
  0x39   : > { %p4458_p5 = pnand %p4457_p3, %p4456_p0  ;;  %p4462_p1 = scmp.lt.u32.totalorder %s4460_s29, %s4455_s30 }
  0x3a   : > { %p4464_p4 = scmp.lt.u32.totalorder %s4455_s30, %s4714_s9 }
  0x3b   : > { %p4459_p7 = pneg %p4458_p5  ;;  %p4463_p2 = por %p4462_p1, %p4461_p9 }
  0x3d   : > { %p4465_p6 = por %p4464_p4, %p4463_p2 }
  0x3f   : > { %p4466_p8 = pnand %p4465_p6, %p4459_p7 }
  0x41   : > { %4469 = shalt.err (!%p4466_p8)
}
  0x42   : > { %s4470_s26 = scalar_lea.vmem %s4716_s18, 8192  ;;  %s4576_s21 = smov [#allocation3]  }
  0x43   : > { %p4471_p12 = scmp.ne.s32.totalorder %s4716_s18, %s4470_s26  ;;  %s4475_s4 = sshll.u32 %s4576_s21, 4  ;;  %s4476_s4 = int_to_ptr.vmem [resolvable:$false] %s4475_s4 }
  0x44   : > { %s4477_s6 = scalar_lea.vmem %s4476_s4, 16384  ;;  %p4478_p5 = scmp.lt.s32.totalorder %s4716_s18, %s4476_s4 }
  0x45   : > { %p4473_p11 = pnand %p4471_p12, %p4457_p3  ;;  %p4479_p9 = scmp.lt.s32.totalorder %s4477_s6, %s4470_s26 }
  0x47   : > { %p4474_p0 = pneg %p4473_p11  ;;  %p4480_p1 = por %p4479_p9, %p4478_p5 }
  0x49   : > { %p4481_p2 = pnand %p4480_p1, %p4474_p0 }
  0x4b   : > { %4484 = shalt.err (!%p4481_p2)
}
  0x4c   : > { %4292 = dma.hbm_to_vmem [thread:$0]  (!%p4720_p13), %s4714_s9, 8192, %s4716_s18, %s4724_s25, %s4574_s10, %s4574_s10, %s4575_s11  }
  0x4d   : > { %p5254_p3 = scmp.ne.s32.totalorder %s5248_s24, 0 }
  0x4e   : > { %s4758_s30 = sand.u32 (!%p5254_p3), 1, %s4555_s13   ;;  %p5255_p7 = scmp.ne.s32.totalorder (!%p5254_p3), %s5246_s22, 0 }
  0x4f   : > { %214 = sbr.rel (%p5254_p3) target bundleno = 498 (0x1f2), region = 32  ;;  %s3323_s29 = sshll.u32 (!%p5254_p3), %s4758_s30, 9 }
  0x50   : > { %s217_s7 = scalar_lea.sflag (!%p5254_p3), [#allocation4], %s4758_s30  ;;  %s4764_s19 = scalar_lea.vmem (!%p5254_p3), [#allocation3], %s3323_s29 }
  0x56   : > { %4538 = dma.done.wait (%p5255_p7), %s217_s7, 8192  }
  0x57   : > { %4540 = vsyncadd (%p5255_p7), %s217_s7, 4294959104  ;;  %p5256_p13 = scmp.ne.s32.totalorder %s5244_s20, 0 }
  0x59   : > { %4542 = dma.done.wait (%p5256_p13), [#allocation7], 1024  }
  0x5a   : > { %4544 = vsyncadd (%p5256_p13), [#allocation7], 4294966272  ;;  %v4354_v0 = vld [vmem:[#allocation6] sm:$0xff]   ;;  %v4355_v1 = vld [vmem:[#allocation6 + $0x8] sm:$0xff]   ;;  %s4857_s24 = scalar_lea.vmem [#allocation8], %s3323_s29  ;;  %s3661_s9 = sshll.u32 %s4563_s15, 13 }
  0x5b   : > { %4117 = vmatprep.subr.bf16.mxu0 %v4354_v0  ;;  %4261 = vmatprep.subr.bf16.mxu1 %v4354_v0  ;;  %v4356_v2 = vld [vmem:[#allocation6 + $0x10] sm:$0xff]   ;;  %v4357_v3 = vld [vmem:[#allocation6 + $0x18] sm:$0xff]   ;;  %v4362_v4 = vld [vmem:[%s4764_s19] sm:$0xff]   ;;  %s3199_s18 = sshll.u32 %s4857_s24, 4  ;;  %s5181_s8 = scalar_lea.hbm %s5239_s3, %s3661_s9  ;;  %s5183_s18 = int_to_ptr.vmem [resolvable:$true] %s3199_s18 }
  0x5c   : > { %4118 = vmatpush3.bf16.msra.mxu0 %v4354_v0  ;;  %4269 = vmatpush3.bf16.msra.mxu1 %v4354_v0  ;;  %v4363_v5 = vld [vmem:[%s4764_s19 + $0x100] sm:$0xff]   ;;  %v4359_v7 = vld [vmem:[#allocation6 + $0x28] sm:$0xff]   ;;  %v4360_v8 = vld [vmem:[#allocation6 + $0x30] sm:$0xff]   ;;  %s3185_s26 = scalar_lea.sflag [#allocation5], %s4758_s30  ;;  %s4485_s21 = scalar_lea.vmem %s5183_s18, 8192 }
  0x5d   : > { %4119 = vmatprep.subr.bf16.mxu0 %v4355_v1  ;;  %4262 = vmatprep.subr.bf16.mxu1 %v4355_v1  ;;  %v4358_v6 = vld [vmem:[#allocation6 + $0x20] sm:$0xff]   ;;  %v4361_v9 = vld [vmem:[#allocation6 + $0x38] sm:$0xff]   ;;  %v4364_v10 = vld [vmem:[%s4764_s19 + $0x8] sm:$0xff]   ;;  %p4486_p4 = scmp.ne.s32.totalorder %s5183_s18, %s4485_s21  ;;  %s4577_s4 = smov [#allocation8]  }
  0x5e   : > { %4133 = vmatprep.mubr.bf16.mxu0 %v4362_v4  ;;  %4197 = vmatprep.mubr.bf16.mxu1 %v4363_v5  ;;  %v4365_v11 = vld [vmem:[%s4764_s19 + $0x108] sm:$0xff]   ;;  %v4366_v12 = vld [vmem:[%s4764_s19 + $0x10] sm:$0xff]   ;;  %v4368_v14 = vld [vmem:[%s4764_s19 + $0x18] sm:$0xff]   ;;  %s4489_s6 = sshll.u32 %s4577_s4, 4  ;;  %s4490_s6 = int_to_ptr.vmem [resolvable:$false] %s4489_s6 }
  0x5f   : > { %v4367_v13 = vld [vmem:[%s4764_s19 + $0x110] sm:$0xff]   ;;  %v4369_v15 = vld [vmem:[%s4764_s19 + $0x118] sm:$0xff]   ;;  %v4370_v16 = vld [vmem:[%s4764_s19 + $0x20] sm:$0xff]   ;;  %p4487_p6 = pnand %p4486_p4, %p4699_p10  ;;  %s4491_s29 = scalar_lea.vmem %s4490_s6, 16384 }
  0x60   : > { %4120 = vmatpush3.bf16.msra.mxu0 %v4355_v1  ;;  %4270 = vmatpush3.bf16.msra.mxu1 %v4355_v1  ;;  %v4371_v17 = vld [vmem:[%s4764_s19 + $0x120] sm:$0xff]   ;;  %v4372_v18 = vld [vmem:[%s4764_s19 + $0x28] sm:$0xff]   ;;  %v4374_v20 = vld [vmem:[%s4764_s19 + $0x30] sm:$0xff]   ;;  %p4492_p12 = scmp.lt.s32.totalorder %s5183_s18, %s4490_s6  ;;  %p4493_p11 = scmp.lt.s32.totalorder %s4491_s29, %s4485_s21 }
  0x61   : > { %4121 = vmatprep.subr.bf16.mxu0 %v4356_v2  ;;  %4263 = vmatprep.subr.bf16.mxu1 %v4356_v2  ;;  %v4373_v19 = vld [vmem:[%s4764_s19 + $0x128] sm:$0xff]   ;;  %v4375_v21 = vld [vmem:[%s4764_s19 + $0x130] sm:$0xff]   ;;  %v4376_v22 = vld [vmem:[%s4764_s19 + $0x38] sm:$0xff]   ;;  %p4488_p8 = pneg %p4487_p6 }
  0x62   : > { %v4377_v23 = vld [vmem:[%s4764_s19 + $0x138] sm:$0xff]   ;;  %v4378_v24 = vld [vmem:[%s4764_s19 + $0x40] sm:$0xff]   ;;  %v4380_v26 = vld [vmem:[%s4764_s19 + $0x48] sm:$0xff]   ;;  %p4494_p0 = por %p4493_p11, %p4492_p12 }
  0x63   : > { %v4379_v25 = vld [vmem:[%s4764_s19 + $0x140] sm:$0xff]   ;;  %v4381_v27 = vld [vmem:[%s4764_s19 + $0x148] sm:$0xff]   ;;  %v4382_v28 = vld [vmem:[%s4764_s19 + $0x50] sm:$0xff]  }
  0x64   : > { %4122 = vmatpush3.bf16.msra.mxu0 %v4356_v2  ;;  %4271 = vmatpush3.bf16.msra.mxu1 %v4356_v2  ;;  %v4383_v29 = vld [vmem:[%s4764_s19 + $0x150] sm:$0xff]   ;;  %v4384_v30 = vld [vmem:[%s4764_s19 + $0x58] sm:$0xff]   ;;  %v4386_v32 = vld [vmem:[%s4764_s19 + $0x60] sm:$0xff]   ;;  %p4495_p5 = pnand %p4494_p0, %p4488_p8 }
  0x65   : > { %4123 = vmatprep.subr.bf16.mxu0 %v4357_v3  ;;  %4264 = vmatprep.subr.bf16.mxu1 %v4357_v3  ;;  %v4385_v31 = vld [vmem:[%s4764_s19 + $0x158] sm:$0xff]   ;;  %v4387_v33 = vld [vmem:[%s4764_s19 + $0x160] sm:$0xff]   ;;  %v4388_v34 = vld [vmem:[%s4764_s19 + $0x68] sm:$0xff]  }
  0x66   : > { %v4389_v35 = vld [vmem:[%s4764_s19 + $0x168] sm:$0xff]   ;;  %v4390_v36 = vld [vmem:[%s4764_s19 + $0x70] sm:$0xff]   ;;  %v4392_v38 = vld [vmem:[%s4764_s19 + $0x78] sm:$0xff]  }
  0x67   : > { %v4391_v37 = vld [vmem:[%s4764_s19 + $0x170] sm:$0xff]   ;;  %v4393_v39 = vld [vmem:[%s4764_s19 + $0x178] sm:$0xff]   ;;  %v4394_v40 = vld [vmem:[%s4764_s19 + $0x80] sm:$0xff]  }
  0x68   : > { %4124 = vmatpush3.bf16.msra.mxu0 %v4357_v3  ;;  %4272 = vmatpush3.bf16.msra.mxu1 %v4357_v3  ;;  %v4395_v41 = vld [vmem:[%s4764_s19 + $0x180] sm:$0xff]   ;;  %v4396_v42 = vld [vmem:[%s4764_s19 + $0x88] sm:$0xff]   ;;  %v4398_v44 = vld [vmem:[%s4764_s19 + $0x90] sm:$0xff]  }
  0x69   : > { %4125 = vmatprep.subr.bf16.mxu0 %v4358_v6  ;;  %4265 = vmatprep.subr.bf16.mxu1 %v4358_v6  ;;  %v4397_v43 = vld [vmem:[%s4764_s19 + $0x188] sm:$0xff]   ;;  %v4399_v45 = vld [vmem:[%s4764_s19 + $0x190] sm:$0xff]   ;;  %v4400_v46 = vld [vmem:[%s4764_s19 + $0x98] sm:$0xff]  }
  0x6a   : > { %v4401_v47 = vld [vmem:[%s4764_s19 + $0x198] sm:$0xff]   ;;  %v4402_v48 = vld [vmem:[%s4764_s19 + $0xa0] sm:$0xff]   ;;  %v4404_v50 = vld [vmem:[%s4764_s19 + $0xa8] sm:$0xff]  }
  0x6b   : > { %v4403_v49 = vld [vmem:[%s4764_s19 + $0x1a0] sm:$0xff]   ;;  %v4405_v51 = vld [vmem:[%s4764_s19 + $0x1a8] sm:$0xff]   ;;  %v4406_v52 = vld [vmem:[%s4764_s19 + $0xb0] sm:$0xff]  }
  0x6c   : > { %4126 = vmatpush3.bf16.msra.mxu0 %v4358_v6  ;;  %4273 = vmatpush3.bf16.msra.mxu1 %v4358_v6  ;;  %v4407_v53 = vld [vmem:[%s4764_s19 + $0x1b0] sm:$0xff]   ;;  %v4408_v54 = vld [vmem:[%s4764_s19 + $0xb8] sm:$0xff]   ;;  %v4410_v56 = vld [vmem:[%s4764_s19 + $0xc0] sm:$0xff]  }
  0x6d   : > { %4127 = vmatprep.subr.bf16.mxu0 %v4359_v7  ;;  %4266 = vmatprep.subr.bf16.mxu1 %v4359_v7  ;;  %v4409_v55 = vld [vmem:[%s4764_s19 + $0x1b8] sm:$0xff]   ;;  %v4411_v57 = vld [vmem:[%s4764_s19 + $0x1c0] sm:$0xff]   ;;  %v4412_v58 = vld [vmem:[%s4764_s19 + $0xc8] sm:$0xff]  }
  0x6e   : > { %v4413_v59 = vld [vmem:[%s4764_s19 + $0x1c8] sm:$0xff]   ;;  %v4414_v60 = vld [vmem:[%s4764_s19 + $0xd0] sm:$0xff]   ;;  %v4416_v62 = vld [vmem:[%s4764_s19 + $0xd8] sm:$0xff]  }
  0x6f   : > { %v4415_v61 = vld [vmem:[%s4764_s19 + $0x1d0] sm:$0xff]   ;;  %v4417_v63 = vld [vmem:[%s4764_s19 + $0x1d8] sm:$0xff]   ;;  %v4418_v0 = vld [vmem:[%s4764_s19 + $0xe0] sm:$0xff]  }
  0x70   : > { %4128 = vmatpush3.bf16.msra.mxu0 %v4359_v7  ;;  %4274 = vmatpush3.bf16.msra.mxu1 %v4359_v7  ;;  %v4419_v1 = vld [vmem:[%s4764_s19 + $0x1e0] sm:$0xff]   ;;  %v4420_v2 = vld [vmem:[%s4764_s19 + $0xe8] sm:$0xff]   ;;  %v4422_v4 = vld [vmem:[%s4764_s19 + $0xf0] sm:$0xff]  }
  0x71   : > { %4129 = vmatprep.subr.bf16.mxu0 %v4360_v8  ;;  %4267 = vmatprep.subr.bf16.mxu1 %v4360_v8  ;;  %v4421_v3 = vld [vmem:[%s4764_s19 + $0x1e8] sm:$0xff]   ;;  %v4423_v5 = vld [vmem:[%s4764_s19 + $0x1f0] sm:$0xff]   ;;  %v4424_v6 = vld [vmem:[%s4764_s19 + $0xf8] sm:$0xff]  }
  0x72   : > { %v4425_v7 = vld [vmem:[%s4764_s19 + $0x1f8] sm:$0xff]  }
  0x74   : > { %4130 = vmatpush3.bf16.msra.mxu0 %v4360_v8  ;;  %4275 = vmatpush3.bf16.msra.mxu1 %v4360_v8  ;;  %v4841_v8 = vld [vmem:[%s5238_s2] ss:$0 sm:$0xff] }
  0x75   : > { %4131 = vmatprep.subr.bf16.mxu0 %v4361_v9  ;;  %4268 = vmatprep.subr.bf16.mxu1 %v4361_v9 }
  0x78   : > { %4132 = vmatpush3.bf16.msra.mxu0 %v4361_v9  ;;  %4276 = vmatpush3.bf16.msra.mxu1 %v4361_v9 }
  0x7b   : > { %4134 = vmatmul.mubr.bf16.vlgmr.msra.gmra.mrb[0].mxu0 %v4364_v10  ;;  %4198 = vmatmul.mubr.bf16.vlgmr.msra.gmra.mrb[0].mxu1 %v4365_v11 }
  0x7c   : > { %4137 = vmatprep.mubr.bf16.mxu0 %v4366_v12  ;;  %4201 = vmatprep.mubr.bf16.mxu1 %v4367_v13 }
  0x83   : > { %4138 = vmatmul.mubr.bf16.gmra.mrb[4].mxu0 %v4368_v14  ;;  %4202 = vmatmul.mubr.bf16.gmra.mrb[4].mxu1 %v4369_v15 }
  0x84   : > { %4141 = vmatprep.mubr.bf16.mxu0 %v4370_v16  ;;  %4205 = vmatprep.mubr.bf16.mxu1 %v4371_v17 }
  0x8b   : > { %4142 = vmatmul.mubr.bf16.gmra.mrb[8].mxu0 %v4372_v18  ;;  %4206 = vmatmul.mubr.bf16.gmra.mrb[8].mxu1 %v4373_v19 }
  0x8c   : > { %4145 = vmatprep.mubr.bf16.mxu0 %v4374_v20  ;;  %4209 = vmatprep.mubr.bf16.mxu1 %v4375_v21 }
  0x93   : > { %4146 = vmatmul.mubr.bf16.gmra.mrb[12].mxu0 %v4376_v22  ;;  %4210 = vmatmul.mubr.bf16.gmra.mrb[12].mxu1 %v4377_v23 }
  0x94   : > { %4149 = vmatprep.mubr.bf16.mxu0 %v4378_v24  ;;  %4213 = vmatprep.mubr.bf16.mxu1 %v4379_v25 }
  0x9b   : > { %4150 = vmatmul.mubr.bf16.gmra.mrb[16].mxu0 %v4380_v26  ;;  %4214 = vmatmul.mubr.bf16.gmra.mrb[16].mxu1 %v4381_v27 }
  0x9c   : > { %4153 = vmatprep.mubr.bf16.mxu0 %v4382_v28  ;;  %4217 = vmatprep.mubr.bf16.mxu1 %v4383_v29 }
  0xa3   : > { %4154 = vmatmul.mubr.bf16.gmra.mrb[20].mxu0 %v4384_v30  ;;  %4218 = vmatmul.mubr.bf16.gmra.mrb[20].mxu1 %v4385_v31 }
  0xa4   : > { %4157 = vmatprep.mubr.bf16.mxu0 %v4386_v32  ;;  %4221 = vmatprep.mubr.bf16.mxu1 %v4387_v33 }
  0xab   : > { %4158 = vmatmul.mubr.bf16.gmra.mrb[24].mxu0 %v4388_v34  ;;  %4222 = vmatmul.mubr.bf16.gmra.mrb[24].mxu1 %v4389_v35 }
  0xac   : > { %4161 = vmatprep.mubr.bf16.mxu0 %v4390_v36  ;;  %4225 = vmatprep.mubr.bf16.mxu1 %v4391_v37 }
  0xb3   : > { %4162 = vmatmul.mubr.bf16.gmra.mrb[28].mxu0 %v4392_v38  ;;  %4226 = vmatmul.mubr.bf16.gmra.mrb[28].mxu1 %v4393_v39 }
  0xb4   : > { %4165 = vmatprep.mubr.bf16.mxu0 %v4394_v40  ;;  %4229 = vmatprep.mubr.bf16.mxu1 %v4395_v41 }
  0xbb   : > { %4166 = vmatmul.mubr.bf16.gmra.mrb[32].mxu0 %v4396_v42  ;;  %4230 = vmatmul.mubr.bf16.gmra.mrb[32].mxu1 %v4397_v43 }
  0xbc   : > { %4169 = vmatprep.mubr.bf16.mxu0 %v4398_v44  ;;  %4233 = vmatprep.mubr.bf16.mxu1 %v4399_v45 }
  0xc3   : > { %4170 = vmatmul.mubr.bf16.gmra.mrb[36].mxu0 %v4400_v46  ;;  %4234 = vmatmul.mubr.bf16.gmra.mrb[36].mxu1 %v4401_v47 }
  0xc4   : > { %4173 = vmatprep.mubr.bf16.mxu0 %v4402_v48  ;;  %4237 = vmatprep.mubr.bf16.mxu1 %v4403_v49 }
  0xcb   : > { %4174 = vmatmul.mubr.bf16.gmra.mrb[40].mxu0 %v4404_v50  ;;  %4238 = vmatmul.mubr.bf16.gmra.mrb[40].mxu1 %v4405_v51 }
  0xcc   : > { %4177 = vmatprep.mubr.bf16.mxu0 %v4406_v52  ;;  %4241 = vmatprep.mubr.bf16.mxu1 %v4407_v53 }
  0xd3   : > { %4178 = vmatmul.mubr.bf16.gmra.mrb[44].mxu0 %v4408_v54  ;;  %4242 = vmatmul.mubr.bf16.gmra.mrb[44].mxu1 %v4409_v55 }
  0xd4   : > { %4181 = vmatprep.mubr.bf16.mxu0 %v4410_v56  ;;  %4245 = vmatprep.mubr.bf16.mxu1 %v4411_v57 }
  0xdb   : > { %4182 = vmatmul.mubr.bf16.gmra.mrb[48].mxu0 %v4412_v58  ;;  %4246 = vmatmul.mubr.bf16.gmra.mrb[48].mxu1 %v4413_v59 }
  0xdc   : > { %4185 = vmatprep.mubr.bf16.mxu0 %v4414_v60  ;;  %4249 = vmatprep.mubr.bf16.mxu1 %v4415_v61 }
  0xe3   : > { %4186 = vmatmul.mubr.bf16.gmra.mrb[52].mxu0 %v4416_v62  ;;  %4250 = vmatmul.mubr.bf16.gmra.mrb[52].mxu1 %v4417_v63 }
  0xe4   : > { %4189 = vmatprep.mubr.bf16.mxu0 %v4418_v0  ;;  %4253 = vmatprep.mubr.bf16.mxu1 %v4419_v1 }
  0xeb   : > { %4190 = vmatmul.mubr.bf16.gmra.mrb[56].mxu0 %v4420_v2  ;;  %4254 = vmatmul.mubr.bf16.gmra.mrb[56].mxu1 %v4421_v3 }
  0xec   : > { %4193 = vmatprep.mubr.bf16.mxu0 %v4422_v4  ;;  %4257 = vmatprep.mubr.bf16.mxu1 %v4423_v5 }
  0xf3   : > { %4194 = vmatmul.mubr.bf16.gmra.mrb[60].mxu0 %v4424_v6  ;;  %4258 = vmatmul.mubr.bf16.gmra.mrb[60].mxu1 %v4425_v7 }
 0x14e   : > { %v4135_v9 = vpop.f32.mrb[0].mxu0  ;;  %v4199_v10 = vpop.f32.mrb[0].mxu1 }
 0x14f   : > { %v2034_v11 = vadd.f32 %v4135_v9, %v4841_v8  ;;  %v2098_v12 = vadd.f32 %v4199_v10, %v4841_v8  ;;  %v1127_v13 = vpop.f32.mrb[1].mxu0  ;;  %v1383_v14 = vpop.f32.mrb[1].mxu1 }
 0x150   : > { %v2032_v15 = vadd.f32 %v4841_v8, %v1127_v13  ;;  %v2096_v16 = vadd.f32 %v4841_v8, %v1383_v14  ;;  %v4136_v17 = vpop.f32.mrb[2].mxu0  ;;  %v4200_v18 = vpop.f32.mrb[2].mxu1 }
 0x151   : > { %vm2162_vm0 = vcmp.gt.f32.partialorder %v2034_v11, 0.0  ;;  %v2290_v19 = vmul.f32 0.1, %v2034_v11  ;;  %vm2226_vm1 = vcmp.gt.f32.partialorder %v2098_v12, 0.0  ;;  %v2354_v20 = vmul.f32 0.1, %v2098_v12 }
 0x152   : > { %vm2160_vm2 = vcmp.gt.f32.partialorder %v2032_v15, 0.0  ;;  %v2288_v21 = vmul.f32 0.1, %v2032_v15  ;;  %vm2224_vm3 = vcmp.gt.f32.partialorder %v2096_v16, 0.0  ;;  %v2352_v22 = vmul.f32 0.1, %v2096_v16 }
 0x153   : > { %v2035_v23 = vadd.f32 %v4136_v17, %v4841_v8  ;;  %v2099_v24 = vadd.f32 %v4200_v18, %v4841_v8  ;;  %v1130_v25 = vpop.f32.mrb[3].mxu0  ;;  %v1386_v26 = vpop.f32.mrb[3].mxu1  ;;  %v2418_v27 = vsel %vm2162_vm0, %v2034_v11, %v2290_v19  ;;  %v2482_v28 = vsel %vm2226_vm1, %v2098_v12, %v2354_v20 }
 0x154   : > { %v2033_v29 = vadd.f32 %v4841_v8, %v1130_v25  ;;  %v2097_v30 = vadd.f32 %v4841_v8, %v1386_v26  ;;  %v2416_v35 = vsel %vm2160_vm2, %v2032_v15, %v2288_v21  ;;  %v2480_v36 = vsel %vm2224_vm3, %v2096_v16, %v2352_v22 }
 0x155   : > { %vm2163_vm4 = vcmp.gt.f32.partialorder %v2035_v23, 0.0  ;;  %v2291_v31 = vmul.f32 0.1, %v2035_v23  ;;  %vm2227_vm5 = vcmp.gt.f32.partialorder %v2099_v24, 0.0  ;;  %v2355_v32 = vmul.f32 0.1, %v2099_v24 }
 0x156   : > { %vm2161_vm6 = vcmp.gt.f32.partialorder %v2033_v29, 0.0  ;;  %v2289_v33 = vmul.f32 0.1, %v2033_v29  ;;  %vm2225_vm7 = vcmp.gt.f32.partialorder %v2097_v30, 0.0  ;;  %v2353_v34 = vmul.f32 0.1, %v2097_v30 }
 0x157   : > { %v2419_v37 = vsel %vm2163_vm4, %v2035_v23, %v2291_v31  ;;  %v2483_v38 = vsel %vm2227_vm5, %v2099_v24, %v2355_v32  ;;  %v4139_v39 = vpop.f32.mrb[4].mxu0  ;;  %v4203_v40 = vpop.f32.mrb[4].mxu1 }
 0x158   : > { %v3670_v41 = vpack.c.bf16 %v2419_v37, %v2418_v27  ;;  %v3830_v42 = vpack.c.bf16 %v2483_v38, %v2482_v28  ;;  %v2417_v43 = vsel %vm2161_vm6, %v2033_v29, %v2289_v33  ;;  %v2481_v44 = vsel %vm2225_vm7, %v2097_v30, %v2353_v34  ;;  %v1143_v45 = vpop.f32.mrb[5].mxu0  ;;  %v1399_v46 = vpop.f32.mrb[5].mxu1 }
 0x159   : > { %v3665_v47 = vpack.c.bf16 %v2417_v43, %v2416_v35  ;;  %v3825_v48 = vpack.c.bf16 %v2481_v44, %v2480_v36  ;;  %v2038_v49 = vadd.f32 %v4139_v39, %v4841_v8  ;;  %v2102_v50 = vadd.f32 %v4203_v40, %v4841_v8  ;;  %v4140_v51 = vpop.f32.mrb[6].mxu0  ;;  %v4204_v52 = vpop.f32.mrb[6].mxu1 }
 0x15a   : > { %3982 = vst [vmem:[%s4857_s24 + $0x8] sm:$0xff] %v3670_v41   ;;  %4014 = vst [vmem:[%s4857_s24 + $0x108] sm:$0xff] %v3830_v42   ;;  %v2036_v53 = vadd.f32 %v4841_v8, %v1143_v45  ;;  %v2100_v54 = vadd.f32 %v4841_v8, %v1399_v46  ;;  %v2039_v55 = vadd.f32 %v4140_v51, %v4841_v8  ;;  %v1146_v57 = vpop.f32.mrb[7].mxu0  ;;  %v1402_v58 = vpop.f32.mrb[7].mxu1 }
 0x15b   : > { %v2103_v56 = vadd.f32 %v4204_v52, %v4841_v8  ;;  %3666 = vst [vmem:[%s4857_s24] sm:$0xff] %v3665_v47   ;;  %4013 = vst [vmem:[%s4857_s24 + $0x100] sm:$0xff] %v3825_v48   ;;  %vm2166_vm8 = vcmp.gt.f32.partialorder %v2038_v49, 0.0  ;;  %v2294_v59 = vmul.f32 0.1, %v2038_v49  ;;  %vm2230_vm9 = vcmp.gt.f32.partialorder %v2102_v50, 0.0 }
 0x15c   : > { %v2358_v60 = vmul.f32 0.1, %v2102_v50  ;;  %vm2164_vm10 = vcmp.gt.f32.partialorder %v2036_v53, 0.0  ;;  %v2292_v61 = vmul.f32 0.1, %v2036_v53  ;;  %vm2228_vm11 = vcmp.gt.f32.partialorder %v2100_v54, 0.0 }
 0x15d   : > { %v2356_v62 = vmul.f32 0.1, %v2100_v54  ;;  %v2422_v63 = vsel %vm2166_vm8, %v2038_v49, %v2294_v59  ;;  %vm2167_vm12 = vcmp.gt.f32.partialorder %v2039_v55, 0.0  ;;  %v2295_v1 = vmul.f32 0.1, %v2039_v55 }
 0x15e   : > { %v2486_v0 = vsel %vm2230_vm9, %v2102_v50, %v2358_v60  ;;  %v2420_v2 = vsel %vm2164_vm10, %v2036_v53, %v2292_v61  ;;  %vm2231_vm13 = vcmp.gt.f32.partialorder %v2103_v56, 0.0  ;;  %v2359_v4 = vmul.f32 0.1, %v2103_v56  ;;  %v4143_v5 = vpop.f32.mrb[8].mxu0  ;;  %v4207_v6 = vpop.f32.mrb[8].mxu1 }
 0x15f   : > { %v2484_v3 = vsel %vm2228_vm11, %v2100_v54, %v2356_v62  ;;  %v2423_v7 = vsel %vm2167_vm12, %v2039_v55, %v2295_v1  ;;  %v2037_v9 = vadd.f32 %v4841_v8, %v1146_v57  ;;  %v2101_v10 = vadd.f32 %v4841_v8, %v1402_v58  ;;  %v1159_v12 = vpop.f32.mrb[9].mxu0  ;;  %v1415_v13 = vpop.f32.mrb[9].mxu1 }
 0x160   : > { %v2042_v11 = vadd.f32 %v4143_v5, %v4841_v8  ;;  %v3680_v14 = vpack.c.bf16 %v2423_v7, %v2422_v63  ;;  %v2487_v15 = vsel %vm2231_vm13, %v2103_v56, %v2359_v4  ;;  %v2106_v16 = vadd.f32 %v4207_v6, %v4841_v8  ;;  %v4144_v18 = vpop.f32.mrb[10].mxu0  ;;  %v4208_v19 = vpop.f32.mrb[10].mxu1 }
 0x161   : > { %v2040_v17 = vadd.f32 %v4841_v8, %v1159_v12  ;;  %v3840_v20 = vpack.c.bf16 %v2487_v15, %v2486_v0  ;;  %vm2165_vm14 = vcmp.gt.f32.partialorder %v2037_v9, 0.0  ;;  %v2293_v21 = vmul.f32 0.1, %v2037_v9  ;;  %v1162_v22 = vpop.f32.mrb[11].mxu0  ;;  %v1418_v23 = vpop.f32.mrb[11].mxu1 }
 0x162   : > { %vm2229_vm15 = vcmp.gt.f32.partialorder %v2101_v10, 0.0  ;;  %3984 = vst [vmem:[%s4857_s24 + $0x18] sm:$0xff] %v3680_v14   ;;  %v2357_v24 = vmul.f32 0.1, %v2101_v10  ;;  %vm2170_vm0 = vcmp.gt.f32.partialorder %v2042_v11, 0.0  ;;  %vm2234_vm1 = vcmp.gt.f32.partialorder %v2106_v16, 0.0 }
 0x163   : > { %v2298_v25 = vmul.f32 0.1, %v2042_v11  ;;  %4016 = vst [vmem:[%s4857_s24 + $0x118] sm:$0xff] %v3840_v20   ;;  %v2421_v26 = vsel %vm2165_vm14, %v2037_v9, %v2293_v21  ;;  %v2362_v27 = vmul.f32 0.1, %v2106_v16  ;;  %vm2168_vm2 = vcmp.gt.f32.partialorder %v2040_v17, 0.0 }
 0x164   : > { %v2296_v28 = vmul.f32 0.1, %v2040_v17  ;;  %v3675_v29 = vpack.c.bf16 %v2421_v26, %v2420_v2  ;;  %v2485_v30 = vsel %vm2229_vm15, %v2101_v10, %v2357_v24  ;;  %v2104_v32 = vadd.f32 %v4841_v8, %v1415_v13 }
 0x165   : > { %v2426_v31 = vsel %vm2170_vm0, %v2042_v11, %v2298_v25  ;;  %v3835_v33 = vpack.c.bf16 %v2485_v30, %v2484_v3  ;;  %v2490_v34 = vsel %vm2234_vm1, %v2106_v16, %v2362_v27  ;;  %v2043_v36 = vadd.f32 %v4144_v18, %v4841_v8 }
 0x166   : > { %v2424_v35 = vsel %vm2168_vm2, %v2040_v17, %v2296_v28  ;;  %3983 = vst [vmem:[%s4857_s24 + $0x10] sm:$0xff] %v3675_v29   ;;  %vm2232_vm3 = vcmp.gt.f32.partialorder %v2104_v32, 0.0  ;;  %v2360_v37 = vmul.f32 0.1, %v2104_v32  ;;  %v2107_v38 = vadd.f32 %v4208_v19, %v4841_v8  ;;  %v4147_v40 = vpop.f32.mrb[12].mxu0  ;;  %v4211_v41 = vpop.f32.mrb[12].mxu1 }
 0x167   : > { %v2041_v39 = vadd.f32 %v4841_v8, %v1162_v22  ;;  %4015 = vst [vmem:[%s4857_s24 + $0x110] sm:$0xff] %v3835_v33   ;;  %vm2171_vm4 = vcmp.gt.f32.partialorder %v2043_v36, 0.0  ;;  %v2299_v42 = vmul.f32 0.1, %v2043_v36  ;;  %v2105_v43 = vadd.f32 %v4841_v8, %v1418_v23  ;;  %v1175_v45 = vpop.f32.mrb[13].mxu0  ;;  %v1431_v46 = vpop.f32.mrb[13].mxu1 }
 0x168   : > { %v2046_v44 = vadd.f32 %v4147_v40, %v4841_v8  ;;  %v2488_v47 = vsel %vm2232_vm3, %v2104_v32, %v2360_v37  ;;  %vm2235_vm5 = vcmp.gt.f32.partialorder %v2107_v38, 0.0  ;;  %v2363_v48 = vmul.f32 0.1, %v2107_v38  ;;  %v4148_v49 = vpop.f32.mrb[14].mxu0  ;;  %v4212_v50 = vpop.f32.mrb[14].mxu1 }
 0x169   : > { %vm2169_vm6 = vcmp.gt.f32.partialorder %v2041_v39, 0.0  ;;  %v2427_v51 = vsel %vm2171_vm4, %v2043_v36, %v2299_v42  ;;  %v2297_v52 = vmul.f32 0.1, %v2041_v39  ;;  %vm2233_vm7 = vcmp.gt.f32.partialorder %v2105_v43, 0.0  ;;  %v1178_v54 = vpop.f32.mrb[15].mxu0  ;;  %v1434_v58 = vpop.f32.mrb[15].mxu1 }
 0x16a   : > { %v2361_v53 = vmul.f32 0.1, %v2105_v43  ;;  %v3690_v55 = vpack.c.bf16 %v2427_v51, %v2426_v31  ;;  %v2491_v56 = vsel %vm2235_vm5, %v2107_v38, %v2363_v48  ;;  %vm2174_vm8 = vcmp.gt.f32.partialorder %v2046_v44, 0.0 }
 0x16b   : > { %v2302_v57 = vmul.f32 0.1, %v2046_v44  ;;  %v3850_v59 = vpack.c.bf16 %v2491_v56, %v2490_v34  ;;  %v2425_v60 = vsel %vm2169_vm6, %v2041_v39, %v2297_v52  ;;  %v2110_v62 = vadd.f32 %v4211_v41, %v4841_v8 }
 0x16c   : > { %v2489_v61 = vsel %vm2233_vm7, %v2105_v43, %v2361_v53  ;;  %3986 = vst [vmem:[%s4857_s24 + $0x28] sm:$0xff] %v3690_v55   ;;  %v3685_v63 = vpack.c.bf16 %v2425_v60, %v2424_v35  ;;  %v2044_v2 = vadd.f32 %v4841_v8, %v1175_v45  ;;  %v2108_v4 = vadd.f32 %v4841_v8, %v1431_v46 }
 0x16d   : > { %v3845_v0 = vpack.c.bf16 %v2489_v61, %v2488_v47  ;;  %v2430_v1 = vsel %vm2174_vm8, %v2046_v44, %v2302_v57  ;;  %4018 = vst [vmem:[%s4857_s24 + $0x128] sm:$0xff] %v3850_v59   ;;  %vm2238_vm9 = vcmp.gt.f32.partialorder %v2110_v62, 0.0  ;;  %v2366_v3 = vmul.f32 0.1, %v2110_v62 }
 0x16e   : > { %v2047_v5 = vadd.f32 %v4148_v49, %v4841_v8  ;;  %3985 = vst [vmem:[%s4857_s24 + $0x20] sm:$0xff] %v3685_v63   ;;  %vm2172_vm10 = vcmp.gt.f32.partialorder %v2044_v2, 0.0  ;;  %v2300_v6 = vmul.f32 0.1, %v2044_v2  ;;  %v2111_v7 = vadd.f32 %v4212_v50, %v4841_v8  ;;  %v4151_v10 = vpop.f32.mrb[16].mxu0  ;;  %v4215_v11 = vpop.f32.mrb[16].mxu1 }
 0x16f   : > { %4017 = vst [vmem:[%s4857_s24 + $0x120] sm:$0xff] %v3845_v0   ;;  %v2045_v9 = vadd.f32 %v4841_v8, %v1178_v54  ;;  %v2494_v12 = vsel %vm2238_vm9, %v2110_v62, %v2366_v3  ;;  %vm2236_vm11 = vcmp.gt.f32.partialorder %v2108_v4, 0.0  ;;  %v2364_v13 = vmul.f32 0.1, %v2108_v4  ;;  %v1191_v14 = vpop.f32.mrb[17].mxu0  ;;  %v1447_v15 = vpop.f32.mrb[17].mxu1 }
 0x170   : > { %vm2175_vm12 = vcmp.gt.f32.partialorder %v2047_v5, 0.0  ;;  %v2428_v16 = vsel %vm2172_vm10, %v2044_v2, %v2300_v6  ;;  %v2303_v17 = vmul.f32 0.1, %v2047_v5  ;;  %vm2239_vm13 = vcmp.gt.f32.partialorder %v2111_v7, 0.0  ;;  %v4152_v19 = vpop.f32.mrb[18].mxu0  ;;  %v4216_v23 = vpop.f32.mrb[18].mxu1 }
 0x171   : > { %v2367_v18 = vmul.f32 0.1, %v2111_v7  ;;  %v2492_v20 = vsel %vm2236_vm11, %v2108_v4, %v2364_v13  ;;  %vm2173_vm14 = vcmp.gt.f32.partialorder %v2045_v9, 0.0  ;;  %v2301_v21 = vmul.f32 0.1, %v2045_v9  ;;  %v1194_v24 = vpop.f32.mrb[19].mxu0 }
 0x172   : > { %v2109_v22 = vadd.f32 %v4841_v8, %v1434_v58  ;;  %v2431_v25 = vsel %vm2175_vm12, %v2047_v5, %v2303_v17  ;;  %v2050_v27 = vadd.f32 %v4151_v10, %v4841_v8  ;;  %v2114_v28 = vadd.f32 %v4215_v11, %v4841_v8  ;;  %v1450_v29 = vpop.f32.mrb[19].mxu1 }
 0x173   : > { %v2495_v26 = vsel %vm2239_vm13, %v2111_v7, %v2367_v18  ;;  %v3700_v30 = vpack.c.bf16 %v2431_v25, %v2430_v1  ;;  %v2429_v32 = vsel %vm2173_vm14, %v2045_v9, %v2301_v21  ;;  %v2048_v37 = vadd.f32 %v4841_v8, %v1191_v14 }
 0x174   : > { %v3860_v31 = vpack.c.bf16 %v2495_v26, %v2494_v12  ;;  %vm2237_vm15 = vcmp.gt.f32.partialorder %v2109_v22, 0.0  ;;  %v3695_v33 = vpack.c.bf16 %v2429_v32, %v2428_v16  ;;  %v2365_v34 = vmul.f32 0.1, %v2109_v22 }
 0x175   : > { %vm2178_vm0 = vcmp.gt.f32.partialorder %v2050_v27, 0.0  ;;  %v2306_v35 = vmul.f32 0.1, %v2050_v27  ;;  %3988 = vst [vmem:[%s4857_s24 + $0x38] sm:$0xff] %v3700_v30   ;;  %vm2242_vm1 = vcmp.gt.f32.partialorder %v2114_v28, 0.0  ;;  %v2112_v38 = vadd.f32 %v4841_v8, %v1447_v15 }
 0x176   : > { %4020 = vst [vmem:[%s4857_s24 + $0x138] sm:$0xff] %v3860_v31   ;;  %v2370_v36 = vmul.f32 0.1, %v2114_v28  ;;  %3987 = vst [vmem:[%s4857_s24 + $0x30] sm:$0xff] %v3695_v33   ;;  %v2493_v39 = vsel %vm2237_vm15, %v2109_v22, %v2365_v34  ;;  %v2051_v41 = vadd.f32 %v4152_v19, %v4841_v8  ;;  %v2115_v42 = vadd.f32 %v4216_v23, %v4841_v8  ;;  %v4155_v43 = vpop.f32.mrb[20].mxu0  ;;  %v4219_v44 = vpop.f32.mrb[20].mxu1 }
 0x177   : > { %v2434_v40 = vsel %vm2178_vm0, %v2050_v27, %v2306_v35  ;;  %v3855_v45 = vpack.c.bf16 %v2493_v39, %v2492_v20  ;;  %vm2176_vm2 = vcmp.gt.f32.partialorder %v2048_v37, 0.0  ;;  %v2304_v47 = vmul.f32 0.1, %v2048_v37  ;;  %v1207_v48 = vpop.f32.mrb[21].mxu0  ;;  %v1463_v49 = vpop.f32.mrb[21].mxu1 }
 0x178   : > { %v2498_v46 = vsel %vm2242_vm1, %v2114_v28, %v2370_v36  ;;  %vm2240_vm3 = vcmp.gt.f32.partialorder %v2112_v38, 0.0  ;;  %v2368_v50 = vmul.f32 0.1, %v2112_v38  ;;  %vm2179_vm4 = vcmp.gt.f32.partialorder %v2051_v41, 0.0  ;;  %v4156_v55 = vpop.f32.mrb[22].mxu0  ;;  %v4220_v56 = vpop.f32.mrb[22].mxu1 }
 0x179   : > { %v2307_v51 = vmul.f32 0.1, %v2051_v41  ;;  %4019 = vst [vmem:[%s4857_s24 + $0x130] sm:$0xff] %v3855_v45   ;;  %v2432_v52 = vsel %vm2176_vm2, %v2048_v37, %v2304_v47  ;;  %vm2243_vm5 = vcmp.gt.f32.partialorder %v2115_v42, 0.0  ;;  %v2371_v53 = vmul.f32 0.1, %v2115_v42 }
 0x17a   : > { %v2049_v54 = vadd.f32 %v4841_v8, %v1194_v24  ;;  %v2496_v57 = vsel %vm2240_vm3, %v2112_v38, %v2368_v50  ;;  %v2113_v59 = vadd.f32 %v4841_v8, %v1450_v29  ;;  %v2054_v60 = vadd.f32 %v4155_v43, %v4841_v8  ;;  %v1210_v61 = vpop.f32.mrb[23].mxu0  ;;  %v1466_v62 = vpop.f32.mrb[23].mxu1 }
 0x17b   : > { %v2435_v58 = vsel %vm2179_vm4, %v2051_v41, %v2307_v51  ;;  %v2499_v0 = vsel %vm2243_vm5, %v2115_v42, %v2371_v53  ;;  %v2118_v6 = vadd.f32 %v4219_v44, %v4841_v8  ;;  %v2052_v7 = vadd.f32 %v4841_v8, %v1207_v48 }
 0x17c   : > { %v3710_v63 = vpack.c.bf16 %v2435_v58, %v2434_v40  ;;  %vm2177_vm6 = vcmp.gt.f32.partialorder %v2049_v54, 0.0  ;;  %v2305_v1 = vmul.f32 0.1, %v2049_v54  ;;  %v3870_v2 = vpack.c.bf16 %v2499_v0, %v2498_v46 }
 0x17d   : > { %vm2241_vm7 = vcmp.gt.f32.partialorder %v2113_v59, 0.0  ;;  %v2369_v3 = vmul.f32 0.1, %v2113_v59  ;;  %vm2182_vm8 = vcmp.gt.f32.partialorder %v2054_v60, 0.0  ;;  %v2310_v5 = vmul.f32 0.1, %v2054_v60 }
 0x17e   : > { %3990 = vst [vmem:[%s4857_s24 + $0x48] sm:$0xff] %v3710_v63   ;;  %v2433_v4 = vsel %vm2177_vm6, %v2049_v54, %v2305_v1  ;;  %4022 = vst [vmem:[%s4857_s24 + $0x148] sm:$0xff] %v3870_v2   ;;  %v2116_v11 = vadd.f32 %v4841_v8, %v1463_v49  ;;  %v2055_v12 = vadd.f32 %v4156_v55, %v4841_v8  ;;  %v4159_v13 = vpop.f32.mrb[24].mxu0  ;;  %v4223_v14 = vpop.f32.mrb[24].mxu1  ;;  %vm2246_vm9 = vcmp.gt.f32.partialorder %v2118_v6, 0.0 }
 0x17f   : > { %v3705_v9 = vpack.c.bf16 %v2433_v4, %v2432_v52  ;;  %v2497_v10 = vsel %vm2241_vm7, %v2113_v59, %v2369_v3  ;;  %v2438_v16 = vsel %vm2182_vm8, %v2054_v60, %v2310_v5  ;;  %v2374_v17 = vmul.f32 0.1, %v2118_v6  ;;  %v1223_v18 = vpop.f32.mrb[25].mxu0  ;;  %v1479_v19 = vpop.f32.mrb[25].mxu1 }
 0x180   : > { %v3865_v15 = vpack.c.bf16 %v2497_v10, %v2496_v57  ;;  %vm2180_vm10 = vcmp.gt.f32.partialorder %v2052_v7, 0.0  ;;  %v2308_v20 = vmul.f32 0.1, %v2052_v7  ;;  %vm2244_vm11 = vcmp.gt.f32.partialorder %v2116_v11, 0.0  ;;  %v4160_v25 = vpop.f32.mrb[26].mxu0  ;;  %v4224_v26 = vpop.f32.mrb[26].mxu1 }
 0x181   : > { %3989 = vst [vmem:[%s4857_s24 + $0x40] sm:$0xff] %v3705_v9   ;;  %v2372_v21 = vmul.f32 0.1, %v2116_v11  ;;  %v2502_v22 = vsel %vm2246_vm9, %v2118_v6, %v2374_v17  ;;  %vm2183_vm12 = vcmp.gt.f32.partialorder %v2055_v12, 0.0  ;;  %v2311_v23 = vmul.f32 0.1, %v2055_v12 }
 0x182   : > { %4021 = vst [vmem:[%s4857_s24 + $0x140] sm:$0xff] %v3865_v15   ;;  %v2119_v24 = vadd.f32 %v4220_v56, %v4841_v8  ;;  %v2436_v27 = vsel %vm2180_vm10, %v2052_v7, %v2308_v20  ;;  %v2053_v29 = vadd.f32 %v4841_v8, %v1210_v61  ;;  %v2117_v30 = vadd.f32 %v4841_v8, %v1466_v62  ;;  %v1226_v31 = vpop.f32.mrb[27].mxu0  ;;  %v1482_v32 = vpop.f32.mrb[27].mxu1 }
 0x183   : > { %v2500_v28 = vsel %vm2244_vm11, %v2116_v11, %v2372_v21  ;;  %v2439_v33 = vsel %vm2183_vm12, %v2055_v12, %v2311_v23  ;;  %v2058_v35 = vadd.f32 %v4159_v13, %v4841_v8  ;;  %v2122_v43 = vadd.f32 %v4223_v14, %v4841_v8 }
 0x184   : > { %vm2247_vm13 = vcmp.gt.f32.partialorder %v2119_v24, 0.0  ;;  %v2375_v34 = vmul.f32 0.1, %v2119_v24  ;;  %v3720_v36 = vpack.c.bf16 %v2439_v33, %v2438_v16  ;;  %vm2181_vm14 = vcmp.gt.f32.partialorder %v2053_v29, 0.0 }
 0x185   : > { %v2309_v37 = vmul.f32 0.1, %v2053_v29  ;;  %vm2245_vm15 = vcmp.gt.f32.partialorder %v2117_v30, 0.0  ;;  %v2373_v39 = vmul.f32 0.1, %v2117_v30  ;;  %vm2186_vm0 = vcmp.gt.f32.partialorder %v2058_v35, 0.0 }
 0x186   : > { %v2503_v38 = vsel %vm2247_vm13, %v2119_v24, %v2375_v34  ;;  %v2314_v40 = vmul.f32 0.1, %v2058_v35  ;;  %3992 = vst [vmem:[%s4857_s24 + $0x58] sm:$0xff] %v3720_v36   ;;  %v2056_v44 = vadd.f32 %v4841_v8, %v1223_v18  ;;  %v4163_v45 = vpop.f32.mrb[28].mxu0  ;;  %v4227_v46 = vpop.f32.mrb[28].mxu1  ;;  %v2120_v50 = vadd.f32 %v4841_v8, %v1479_v19 }
 0x187   : > { %v3880_v41 = vpack.c.bf16 %v2503_v38, %v2502_v22  ;;  %v2437_v42 = vsel %vm2181_vm14, %v2053_v29, %v2309_v37  ;;  %v2501_v48 = vsel %vm2245_vm15, %v2117_v30, %v2373_v39  ;;  %v1239_v51 = vpop.f32.mrb[29].mxu0  ;;  %v1495_v52 = vpop.f32.mrb[29].mxu1  ;;  %vm2250_vm1 = vcmp.gt.f32.partialorder %v2122_v43, 0.0 }
 0x188   : > { %v3715_v47 = vpack.c.bf16 %v2437_v42, %v2436_v27  ;;  %v2442_v49 = vsel %vm2186_vm0, %v2058_v35, %v2314_v40  ;;  %v3875_v53 = vpack.c.bf16 %v2501_v48, %v2500_v28  ;;  %v2378_v54 = vmul.f32 0.1, %v2122_v43  ;;  %v4164_v55 = vpop.f32.mrb[30].mxu0  ;;  %v4228_v56 = vpop.f32.mrb[30].mxu1 }
 0x189   : > { %4024 = vst [vmem:[%s4857_s24 + $0x158] sm:$0xff] %v3880_v41   ;;  %vm2184_vm2 = vcmp.gt.f32.partialorder %v2056_v44, 0.0  ;;  %v2312_v57 = vmul.f32 0.1, %v2056_v44  ;;  %vm2248_vm3 = vcmp.gt.f32.partialorder %v2120_v50, 0.0  ;;  %v2059_v59 = vadd.f32 %v4160_v25, %v4841_v8  ;;  %v1242_v60 = vpop.f32.mrb[31].mxu0 }
 0x18a   : > { %3991 = vst [vmem:[%s4857_s24 + $0x50] sm:$0xff] %v3715_v47   ;;  %v2376_v58 = vmul.f32 0.1, %v2120_v50  ;;  %4023 = vst [vmem:[%s4857_s24 + $0x150] sm:$0xff] %v3875_v53   ;;  %v2506_v61 = vsel %vm2250_vm1, %v2122_v43, %v2378_v54  ;;  %v2123_v62 = vadd.f32 %v4224_v26, %v4841_v8  ;;  %v2057_v63 = vadd.f32 %v4841_v8, %v1226_v31  ;;  %v1498_v1 = vpop.f32.mrb[31].mxu1 }
 0x18b   : > { %v2121_v0 = vadd.f32 %v4841_v8, %v1482_v32  ;;  %v2440_v2 = vsel %vm2184_vm2, %v2056_v44, %v2312_v57  ;;  %vm2187_vm4 = vcmp.gt.f32.partialorder %v2059_v59, 0.0  ;;  %v2315_v4 = vmul.f32 0.1, %v2059_v59 }
 0x18c   : > { %v2504_v3 = vsel %vm2248_vm3, %v2120_v50, %v2376_v58  ;;  %vm2251_vm5 = vcmp.gt.f32.partialorder %v2123_v62, 0.0  ;;  %v2379_v5 = vmul.f32 0.1, %v2123_v62  ;;  %vm2185_vm6 = vcmp.gt.f32.partialorder %v2057_v63, 0.0 }
 0x18d   : > { %v2313_v6 = vmul.f32 0.1, %v2057_v63  ;;  %v2443_v7 = vsel %vm2187_vm4, %v2059_v59, %v2315_v4  ;;  %vm2249_vm7 = vcmp.gt.f32.partialorder %v2121_v0, 0.0  ;;  %v2377_v9 = vmul.f32 0.1, %v2121_v0 }
 0x18e   : > { %v2062_v10 = vadd.f32 %v4163_v45, %v4841_v8  ;;  %v3730_v11 = vpack.c.bf16 %v2443_v7, %v2442_v49  ;;  %v2507_v12 = vsel %vm2251_vm5, %v2123_v62, %v2379_v5  ;;  %v2126_v14 = vadd.f32 %v4227_v46, %v4841_v8  ;;  %v4167_v15 = vpop.f32.mrb[32].mxu0  ;;  %v4231_v16 = vpop.f32.mrb[32].mxu1 }
 0x18f   : > { %v2441_v13 = vsel %vm2185_vm6, %v2057_v63, %v2313_v6  ;;  %v3890_v17 = vpack.c.bf16 %v2507_v12, %v2506_v61  ;;  %v2505_v19 = vsel %vm2249_vm7, %v2121_v0, %v2377_v9  ;;  %v1255_v20 = vpop.f32.mrb[33].mxu0  ;;  %v1511_v21 = vpop.f32.mrb[33].mxu1  ;;  %v2060_v26 = vadd.f32 %v4841_v8, %v1239_v51 }
 0x190   : > { %v3725_v18 = vpack.c.bf16 %v2441_v13, %v2440_v2  ;;  %vm2190_vm8 = vcmp.gt.f32.partialorder %v2062_v10, 0.0  ;;  %3994 = vst [vmem:[%s4857_s24 + $0x68] sm:$0xff] %v3730_v11   ;;  %v3885_v22 = vpack.c.bf16 %v2505_v19, %v2504_v3  ;;  %v2318_v23 = vmul.f32 0.1, %v2062_v10  ;;  %v4168_v25 = vpop.f32.mrb[34].mxu0  ;;  %v4232_v30 = vpop.f32.mrb[34].mxu1 }
 0x191   : > { %vm2254_vm9 = vcmp.gt.f32.partialorder %v2126_v14, 0.0  ;;  %v2382_v24 = vmul.f32 0.1, %v2126_v14  ;;  %4026 = vst [vmem:[%s4857_s24 + $0x168] sm:$0xff] %v3890_v17   ;;  %v2124_v27 = vadd.f32 %v4841_v8, %v1495_v52  ;;  %v2063_v28 = vadd.f32 %v4164_v55, %v4841_v8  ;;  %v1258_v31 = vpop.f32.mrb[35].mxu0  ;;  %v1514_v36 = vpop.f32.mrb[35].mxu1 }
 0x192   : > { %3993 = vst [vmem:[%s4857_s24 + $0x60] sm:$0xff] %v3725_v18   ;;  %v2127_v29 = vadd.f32 %v4228_v56, %v4841_v8  ;;  %4025 = vst [vmem:[%s4857_s24 + $0x160] sm:$0xff] %v3885_v22   ;;  %v2446_v32 = vsel %vm2190_vm8, %v2062_v10, %v2318_v23  ;;  %v2061_v34 = vadd.f32 %v4841_v8, %v1242_v60  ;;  %vm2188_vm10 = vcmp.gt.f32.partialorder %v2060_v26, 0.0 }
 0x193   : > { %v2510_v33 = vsel %vm2254_vm9, %v2126_v14, %v2382_v24  ;;  %v2125_v35 = vadd.f32 %v4841_v8, %v1498_v1  ;;  %v2316_v37 = vmul.f32 0.1, %v2060_v26  ;;  %vm2252_vm11 = vcmp.gt.f32.partialorder %v2124_v27, 0.0 }
 0x194   : > { %v2380_v38 = vmul.f32 0.1, %v2124_v27  ;;  %vm2191_vm12 = vcmp.gt.f32.partialorder %v2063_v28, 0.0  ;;  %v2319_v39 = vmul.f32 0.1, %v2063_v28  ;;  %vm2255_vm13 = vcmp.gt.f32.partialorder %v2127_v29, 0.0 }
 0x195   : > { %v2383_v40 = vmul.f32 0.1, %v2127_v29  ;;  %v2444_v41 = vsel %vm2188_vm10, %v2060_v26, %v2316_v37  ;;  %vm2189_vm14 = vcmp.gt.f32.partialorder %v2061_v34, 0.0  ;;  %v2317_v43 = vmul.f32 0.1, %v2061_v34 }
 0x196   : > { %v2508_v42 = vsel %vm2252_vm11, %v2124_v27, %v2380_v38  ;;  %v2447_v44 = vsel %vm2191_vm12, %v2063_v28, %v2319_v39  ;;  %vm2253_vm15 = vcmp.gt.f32.partialorder %v2125_v35, 0.0  ;;  %v2381_v46 = vmul.f32 0.1, %v2125_v35  ;;  %v4171_v47 = vpop.f32.mrb[36].mxu0  ;;  %v4235_v48 = vpop.f32.mrb[36].mxu1 }
 0x197   : > { %v2511_v45 = vsel %vm2255_vm13, %v2127_v29, %v2383_v40  ;;  %v3740_v49 = vpack.c.bf16 %v2447_v44, %v2446_v32  ;;  %v2445_v51 = vsel %vm2189_vm14, %v2061_v34, %v2317_v43  ;;  %v2066_v52 = vadd.f32 %v4167_v15, %v4841_v8  ;;  %v4943_v53 = vpop.f32.mrb[37].mxu0  ;;  %v4945_v54 = vpop.f32.mrb[37].mxu1 }
 0x198   : > { %v3900_v50 = vpack.c.bf16 %v2511_v45, %v2510_v33  ;;  %v3735_v55 = vpack.c.bf16 %v2445_v51, %v2444_v41  ;;  %v2509_v56 = vsel %vm2253_vm15, %v2125_v35, %v2381_v46  ;;  %v2130_v57 = vadd.f32 %v4231_v16, %v4841_v8  ;;  %v4172_v59 = vpop.f32.mrb[38].mxu0  ;;  %v4236_v60 = vpop.f32.mrb[38].mxu1 }
 0x199   : > { %v2064_v58 = vadd.f32 %v4841_v8, %v1255_v20  ;;  %3996 = vst [vmem:[%s4857_s24 + $0x78] sm:$0xff] %v3740_v49   ;;  %v3895_v61 = vpack.c.bf16 %v2509_v56, %v2508_v42  ;;  %vm2194_vm0 = vcmp.gt.f32.partialorder %v2066_v52, 0.0  ;;  %v2322_v62 = vmul.f32 0.1, %v2066_v52  ;;  %v1274_v0 = vpop.f32.mrb[39].mxu0  ;;  %v1530_v1 = vpop.f32.mrb[39].mxu1 }
 0x19a   : > { %4028 = vst [vmem:[%s4857_s24 + $0x178] sm:$0xff] %v3900_v50   ;;  %v2128_v63 = vadd.f32 %v4841_v8, %v1511_v21  ;;  %3995 = vst [vmem:[%s4857_s24 + $0x70] sm:$0xff] %v3735_v55   ;;  %vm2258_vm1 = vcmp.gt.f32.partialorder %v2130_v57, 0.0  ;;  %v2386_v2 = vmul.f32 0.1, %v2130_v57  ;;  %v2067_v6 = vadd.f32 %v4168_v25, %v4841_v8 }
 0x19b   : > { %vm2192_vm2 = vcmp.gt.f32.partialorder %v2064_v58, 0.0  ;;  %v2320_v3 = vmul.f32 0.1, %v2064_v58  ;;  %4027 = vst [vmem:[%s4857_s24 + $0x170] sm:$0xff] %v3895_v61   ;;  %v2450_v4 = vsel %vm2194_vm0, %v2066_v52, %v2322_v62  ;;  %v2131_v10 = vadd.f32 %v4232_v30, %v4841_v8 }
 0x19c   : > { %vm2256_vm3 = vcmp.gt.f32.partialorder %v2128_v63, 0.0  ;;  %v2384_v5 = vmul.f32 0.1, %v2128_v63  ;;  %v2514_v7 = vsel %vm2258_vm1, %v2130_v57, %v2386_v2  ;;  %v2065_v11 = vadd.f32 %v4841_v8, %v1258_v31 }
 0x19d   : > { %v2448_v9 = vsel %vm2192_vm2, %v2064_v58, %v2320_v3  ;;  %vm2195_vm4 = vcmp.gt.f32.partialorder %v2067_v6, 0.0  ;;  %v2323_v13 = vmul.f32 0.1, %v2067_v6  ;;  %v2129_v14 = vadd.f32 %v4841_v8, %v1514_v36 }
 0x19e   : > { %v2512_v12 = vsel %vm2256_vm3, %v2128_v63, %v2384_v5  ;;  %vm2259_vm5 = vcmp.gt.f32.partialorder %v2131_v10, 0.0  ;;  %v2387_v15 = vmul.f32 0.1, %v2131_v10  ;;  %vm2193_vm6 = vcmp.gt.f32.partialorder %v2065_v11, 0.0  ;;  %v4175_v20 = vpop.f32.mrb[40].mxu0  ;;  %v4239_v21 = vpop.f32.mrb[40].mxu1 }
 0x19f   : > { %v2321_v16 = vmul.f32 0.1, %v2065_v11  ;;  %v2451_v17 = vsel %vm2195_vm4, %v2067_v6, %v2323_v13  ;;  %vm2257_vm7 = vcmp.gt.f32.partialorder %v2129_v14, 0.0  ;;  %v2385_v18 = vmul.f32 0.1, %v2129_v14  ;;  %v1287_v26 = vpop.f32.mrb[41].mxu0 }
 0x1a0   : > { %v2070_v19 = vadd.f32 %v4171_v47, %v4841_v8  ;;  %v3750_v22 = vpack.c.bf16 %v2451_v17, %v2450_v4  ;;  %v2515_v23 = vsel %vm2259_vm5, %v2131_v10, %v2387_v15  ;;  %v2134_v25 = vadd.f32 %v4235_v48, %v4841_v8  ;;  %v1543_v27 = vpop.f32.mrb[41].mxu1  ;;  %v4960_v31 = vpop.f32.mrb[42].mxu0 }
 0x1a1   : > { %v2449_v24 = vsel %vm2193_vm6, %v2065_v11, %v2321_v16  ;;  %v3910_v28 = vpack.c.bf16 %v2515_v23, %v2514_v7  ;;  %v2513_v30 = vsel %vm2257_vm7, %v2129_v14, %v2385_v18  ;;  %v4962_v32 = vpop.f32.mrb[42].mxu1  ;;  %v4965_v36 = vpop.f32.mrb[43].mxu0  ;;  %v2068_v37 = vadd.f32 %v4841_v8, %v4943_v53 }
 0x1a2   : > { %v3745_v29 = vpack.c.bf16 %v2449_v24, %v2448_v9  ;;  %vm2198_vm8 = vcmp.gt.f32.partialorder %v2070_v19, 0.0  ;;  %3998 = vst [vmem:[%s4857_s24 + $0x88] sm:$0xff] %v3750_v22   ;;  %v3905_v33 = vpack.c.bf16 %v2513_v30, %v2512_v12  ;;  %v2326_v34 = vmul.f32 0.1, %v2070_v19  ;;  %v4975_v41 = vpop.f32.mrb[43].mxu1 }
 0x1a3   : > { %vm2262_vm9 = vcmp.gt.f32.partialorder %v2134_v25, 0.0  ;;  %v2390_v35 = vmul.f32 0.1, %v2134_v25  ;;  %4030 = vst [vmem:[%s4857_s24 + $0x188] sm:$0xff] %v3910_v28   ;;  %v2132_v38 = vadd.f32 %v4841_v8, %v4945_v54  ;;  %v2071_v39 = vadd.f32 %v4172_v59, %v4841_v8 }
 0x1a4   : > { %3997 = vst [vmem:[%s4857_s24 + $0x80] sm:$0xff] %v3745_v29   ;;  %v2135_v40 = vadd.f32 %v4236_v60, %v4841_v8  ;;  %4029 = vst [vmem:[%s4857_s24 + $0x180] sm:$0xff] %v3905_v33   ;;  %v2454_v42 = vsel %vm2198_vm8, %v2070_v19, %v2326_v34  ;;  %v2069_v44 = vadd.f32 %v4841_v8, %v1274_v0  ;;  %vm2196_vm10 = vcmp.gt.f32.partialorder %v2068_v37, 0.0  ;;  %v5006_v19 = vld [vmem:[%s5238_s2] ss:$0 sm:$0xff] }
 0x1a5   : > { %v2518_v43 = vsel %vm2262_vm9, %v2134_v25, %v2390_v35  ;;  %v2133_v45 = vadd.f32 %v4841_v8, %v1530_v1  ;;  %v2324_v46 = vmul.f32 0.1, %v2068_v37  ;;  %vm2260_vm11 = vcmp.gt.f32.partialorder %v2132_v38, 0.0 }
 0x1a6   : > { %v2388_v47 = vmul.f32 0.1, %v2132_v38  ;;  %vm2199_vm12 = vcmp.gt.f32.partialorder %v2071_v39, 0.0  ;;  %v2327_v48 = vmul.f32 0.1, %v2071_v39  ;;  %vm2263_vm13 = vcmp.gt.f32.partialorder %v2135_v40, 0.0 }
 0x1a7   : > { %v2391_v49 = vmul.f32 0.1, %v2135_v40  ;;  %v2452_v50 = vsel %vm2196_vm10, %v2068_v37, %v2324_v46  ;;  %vm2197_vm14 = vcmp.gt.f32.partialorder %v2069_v44, 0.0  ;;  %v2325_v52 = vmul.f32 0.1, %v2069_v44  ;;  %v4179_v53 = vpop.f32.mrb[44].mxu0 }
 0x1a8   : > { %v2516_v51 = vsel %vm2260_vm11, %v2132_v38, %v2388_v47  ;;  %v4243_v54 = vpop.f32.mrb[44].mxu1  ;;  %v2455_v55 = vsel %vm2199_vm12, %v2071_v39, %v2327_v48  ;;  %vm2261_vm15 = vcmp.gt.f32.partialorder %v2133_v45, 0.0  ;;  %v2389_v57 = vmul.f32 0.1, %v2133_v45  ;;  %v4981_v58 = vpop.f32.mrb[45].mxu0 }
 0x1a9   : > { %v2519_v56 = vsel %vm2263_vm13, %v2135_v40, %v2391_v49  ;;  %v4983_v59 = vpop.f32.mrb[45].mxu1  ;;  %v3760_v60 = vpack.c.bf16 %v2455_v55, %v2454_v42  ;;  %v2453_v62 = vsel %vm2197_vm14, %v2069_v44, %v2325_v52  ;;  %v2074_v63 = vadd.f32 %v4175_v20, %v4841_v8  ;;  %v4986_v0 = vpop.f32.mrb[46].mxu0 }
 0x1aa   : > { %v3920_v61 = vpack.c.bf16 %v2519_v56, %v2518_v43  ;;  %v4988_v1 = vpop.f32.mrb[46].mxu1  ;;  %v3755_v2 = vpack.c.bf16 %v2453_v62, %v2452_v50  ;;  %v2517_v3 = vsel %vm2261_vm15, %v2133_v45, %v2389_v57  ;;  %v2138_v4 = vadd.f32 %v4239_v21, %v4841_v8  ;;  %v4992_v6 = vpop.f32.mrb[47].mxu0 }
 0x1ab   : > { %v2072_v5 = vadd.f32 %v4841_v8, %v1287_v26  ;;  %v4994_v7 = vpop.f32.mrb[47].mxu1  ;;  %4000 = vst [vmem:[%s4857_s24 + $0x98] sm:$0xff] %v3760_v60   ;;  %v3915_v9 = vpack.c.bf16 %v2517_v3, %v2516_v51  ;;  %vm2202_vm0 = vcmp.gt.f32.partialorder %v2074_v63, 0.0  ;;  %v2330_v10 = vmul.f32 0.1, %v2074_v63 }
 0x1ac   : > { %4032 = vst [vmem:[%s4857_s24 + $0x198] sm:$0xff] %v3920_v61   ;;  %v2136_v11 = vadd.f32 %v4841_v8, %v1543_v27  ;;  %3999 = vst [vmem:[%s4857_s24 + $0x90] sm:$0xff] %v3755_v2   ;;  %vm2266_vm1 = vcmp.gt.f32.partialorder %v2138_v4, 0.0  ;;  %v2394_v12 = vmul.f32 0.1, %v2138_v4  ;;  %v2075_v16 = vadd.f32 %v4960_v31, %v4841_v8 }
 0x1ad   : > { %vm2200_vm2 = vcmp.gt.f32.partialorder %v2072_v5, 0.0  ;;  %v2328_v13 = vmul.f32 0.1, %v2072_v5  ;;  %4031 = vst [vmem:[%s4857_s24 + $0x190] sm:$0xff] %v3915_v9   ;;  %v2458_v14 = vsel %vm2202_vm0, %v2074_v63, %v2330_v10  ;;  %v2139_v20 = vadd.f32 %v5006_v19, %v4962_v32 }
 0x1ae   : > { %vm2264_vm3 = vcmp.gt.f32.partialorder %v2136_v11, 0.0  ;;  %v2392_v15 = vmul.f32 0.1, %v2136_v11  ;;  %v2522_v17 = vsel %vm2266_vm1, %v2138_v4, %v2394_v12  ;;  %v2073_v21 = vadd.f32 %v5006_v19, %v4965_v36  ;;  %v5012_v22 = vpop.f32.mrb[48].mxu0  ;;  %v5014_v23 = vpop.f32.mrb[48].mxu1 }
 0x1af   : > { %v2456_v18 = vsel %vm2200_vm2, %v2072_v5, %v2328_v13  ;;  %vm2203_vm4 = vcmp.gt.f32.partialorder %v2075_v16, 0.0  ;;  %v2331_v8 = vmul.f32 0.1, %v2075_v16  ;;  %v2137_v25 = vadd.f32 %v5006_v19, %v4975_v41  ;;  %v5018_v26 = vpop.f32.mrb[49].mxu0  ;;  %v5020_v27 = vpop.f32.mrb[49].mxu1 }
 0x1b0   : > { %v2520_v24 = vsel %vm2264_vm3, %v2136_v11, %v2392_v15  ;;  %vm2267_vm5 = vcmp.gt.f32.partialorder %v2139_v20, 0.0  ;;  %v2395_v28 = vmul.f32 0.1, %v2139_v20  ;;  %vm2201_vm6 = vcmp.gt.f32.partialorder %v2073_v21, 0.0  ;;  %v5023_v33 = vpop.f32.mrb[50].mxu0  ;;  %v5025_v34 = vpop.f32.mrb[50].mxu1 }
 0x1b1   : > { %v2329_v29 = vmul.f32 0.1, %v2073_v21  ;;  %v2459_v30 = vsel %vm2203_vm4, %v2075_v16, %v2331_v8  ;;  %vm2265_vm7 = vcmp.gt.f32.partialorder %v2137_v25, 0.0  ;;  %v2393_v31 = vmul.f32 0.1, %v2137_v25  ;;  %v5028_v39 = vpop.f32.mrb[51].mxu0 }
 0x1b2   : > { %v2078_v32 = vadd.f32 %v5006_v19, %v4179_v53  ;;  %v3770_v35 = vpack.c.bf16 %v2459_v30, %v2458_v14  ;;  %v2523_v36 = vsel %vm2267_vm5, %v2139_v20, %v2395_v28  ;;  %v2142_v38 = vadd.f32 %v5006_v19, %v4243_v54  ;;  %v5030_v40 = vpop.f32.mrb[51].mxu1 }
 0x1b3   : > { %v2457_v37 = vsel %vm2201_vm6, %v2073_v21, %v2329_v29  ;;  %v3930_v41 = vpack.c.bf16 %v2523_v36, %v2522_v17  ;;  %v2521_v43 = vsel %vm2265_vm7, %v2137_v25, %v2393_v31  ;;  %v2076_v47 = vadd.f32 %v5006_v19, %v4981_v58 }
 0x1b4   : > { %v3765_v42 = vpack.c.bf16 %v2457_v37, %v2456_v18  ;;  %vm2206_vm8 = vcmp.gt.f32.partialorder %v2078_v32, 0.0  ;;  %4002 = vst [vmem:[%s4857_s24 + $0xa8] sm:$0xff] %v3770_v35   ;;  %v3925_v44 = vpack.c.bf16 %v2521_v43, %v2520_v24  ;;  %v2334_v45 = vmul.f32 0.1, %v2078_v32 }
 0x1b5   : > { %vm2270_vm9 = vcmp.gt.f32.partialorder %v2142_v38, 0.0  ;;  %v2398_v46 = vmul.f32 0.1, %v2142_v38  ;;  %4034 = vst [vmem:[%s4857_s24 + $0x1a8] sm:$0xff] %v3930_v41   ;;  %v2140_v48 = vadd.f32 %v5006_v19, %v4983_v59  ;;  %v2079_v49 = vadd.f32 %v5006_v19, %v4986_v0 }
 0x1b6   : > { %4001 = vst [vmem:[%s4857_s24 + $0xa0] sm:$0xff] %v3765_v42   ;;  %v2143_v50 = vadd.f32 %v5006_v19, %v4988_v1  ;;  %4033 = vst [vmem:[%s4857_s24 + $0x1a0] sm:$0xff] %v3925_v44   ;;  %v2462_v51 = vsel %vm2206_vm8, %v2078_v32, %v2334_v45  ;;  %v2077_v53 = vadd.f32 %v5006_v19, %v4992_v6  ;;  %v5048_v55 = vpop.f32.mrb[52].mxu0  ;;  %v5050_v56 = vpop.f32.mrb[52].mxu1  ;;  %vm2204_vm10 = vcmp.gt.f32.partialorder %v2076_v47, 0.0 }
 0x1b7   : > { %v2526_v52 = vsel %vm2270_vm9, %v2142_v38, %v2398_v46  ;;  %v2141_v54 = vadd.f32 %v5006_v19, %v4994_v7  ;;  %v2332_v57 = vmul.f32 0.1, %v2076_v47  ;;  %vm2268_vm11 = vcmp.gt.f32.partialorder %v2140_v48, 0.0  ;;  %v5052_v0 = vpop.f32.mrb[53].mxu0  ;;  %v5054_v1 = vpop.f32.mrb[53].mxu1 }
 0x1b8   : > { %v2396_v58 = vmul.f32 0.1, %v2140_v48  ;;  %vm2207_vm12 = vcmp.gt.f32.partialorder %v2079_v49, 0.0  ;;  %v2335_v59 = vmul.f32 0.1, %v2079_v49  ;;  %vm2271_vm13 = vcmp.gt.f32.partialorder %v2143_v50, 0.0 }
 0x1b9   : > { %v2399_v60 = vmul.f32 0.1, %v2143_v50  ;;  %v2460_v61 = vsel %vm2204_vm10, %v2076_v47, %v2332_v57  ;;  %vm2205_vm14 = vcmp.gt.f32.partialorder %v2077_v53, 0.0  ;;  %v2333_v63 = vmul.f32 0.1, %v2077_v53  ;;  %v5056_v5 = vpop.f32.mrb[54].mxu0 }
 0x1ba   : > { %v2524_v62 = vsel %vm2268_vm11, %v2140_v48, %v2396_v58  ;;  %v2463_v2 = vsel %vm2207_vm12, %v2079_v49, %v2335_v59  ;;  %vm2269_vm15 = vcmp.gt.f32.partialorder %v2141_v54, 0.0  ;;  %v2397_v4 = vmul.f32 0.1, %v2141_v54  ;;  %v5058_v6 = vpop.f32.mrb[54].mxu1  ;;  %v5062_v12 = vpop.f32.mrb[55].mxu0 }
 0x1bb   : > { %v2527_v3 = vsel %vm2271_vm13, %v2143_v50, %v2399_v60  ;;  %v3780_v7 = vpack.c.bf16 %v2463_v2, %v2462_v51  ;;  %v2461_v10 = vsel %vm2205_vm14, %v2077_v53, %v2333_v63  ;;  %v2082_v11 = vadd.f32 %v5006_v19, %v5012_v22  ;;  %v5064_v13 = vpop.f32.mrb[55].mxu1 }
 0x1bc   : > { %v3940_v9 = vpack.c.bf16 %v2527_v3, %v2526_v52  ;;  %v3775_v14 = vpack.c.bf16 %v2461_v10, %v2460_v61  ;;  %v2525_v15 = vsel %vm2269_vm15, %v2141_v54, %v2397_v4  ;;  %v2146_v16 = vadd.f32 %v5006_v19, %v5014_v23 }
 0x1bd   : > { %v2080_v17 = vadd.f32 %v5006_v19, %v5018_v26  ;;  %4004 = vst [vmem:[%s4857_s24 + $0xb8] sm:$0xff] %v3780_v7   ;;  %v3935_v18 = vpack.c.bf16 %v2525_v15, %v2524_v62  ;;  %vm2210_vm0 = vcmp.gt.f32.partialorder %v2082_v11, 0.0  ;;  %v2338_v20 = vmul.f32 0.1, %v2082_v11 }
 0x1be   : > { %4036 = vst [vmem:[%s4857_s24 + $0x1b8] sm:$0xff] %v3940_v9   ;;  %v2144_v21 = vadd.f32 %v5006_v19, %v5020_v27  ;;  %4003 = vst [vmem:[%s4857_s24 + $0xb0] sm:$0xff] %v3775_v14   ;;  %vm2274_vm1 = vcmp.gt.f32.partialorder %v2146_v16, 0.0  ;;  %v2402_v22 = vmul.f32 0.1, %v2146_v16  ;;  %v2083_v25 = vadd.f32 %v5006_v19, %v5023_v33  ;;  %v5078_v26 = vpop.f32.mrb[56].mxu0 }
 0x1bf   : > { %vm2208_vm2 = vcmp.gt.f32.partialorder %v2080_v17, 0.0  ;;  %v2336_v24 = vmul.f32 0.1, %v2080_v17  ;;  %4035 = vst [vmem:[%s4857_s24 + $0x1b0] sm:$0xff] %v3935_v18   ;;  %v2466_v8 = vsel %vm2210_vm0, %v2082_v11, %v2338_v20  ;;  %v5080_v28 = vpop.f32.mrb[56].mxu1  ;;  %v2147_v27 = vadd.f32 %v5006_v19, %v5025_v34  ;;  %v5086_v32 = vpop.f32.mrb[57].mxu0 }
 0x1c0   : > { %vm2272_vm3 = vcmp.gt.f32.partialorder %v2144_v21, 0.0  ;;  %v2400_v23 = vmul.f32 0.1, %v2144_v21  ;;  %v2530_v29 = vsel %vm2274_vm1, %v2146_v16, %v2402_v22  ;;  %v2081_v31 = vadd.f32 %v5006_v19, %v5028_v39  ;;  %v5088_v35 = vpop.f32.mrb[57].mxu1  ;;  %v5092_v38 = vpop.f32.mrb[58].mxu0 }
 0x1c1   : > { %v2464_v30 = vsel %vm2208_vm2, %v2080_v17, %v2336_v24  ;;  %vm2211_vm4 = vcmp.gt.f32.partialorder %v2083_v25, 0.0  ;;  %v2339_v37 = vmul.f32 0.1, %v2083_v25  ;;  %v2145_v33 = vadd.f32 %v5006_v19, %v5030_v40  ;;  %v5094_v41 = vpop.f32.mrb[58].mxu1  ;;  %v5098_v45 = vpop.f32.mrb[59].mxu0 }
 0x1c2   : > { %v2528_v36 = vsel %vm2272_vm3, %v2144_v21, %v2400_v23  ;;  %vm2275_vm5 = vcmp.gt.f32.partialorder %v2147_v27, 0.0  ;;  %v2403_v42 = vmul.f32 0.1, %v2147_v27  ;;  %vm2209_vm6 = vcmp.gt.f32.partialorder %v2081_v31, 0.0  ;;  %v5100_v46 = vpop.f32.mrb[59].mxu1 }
 0x1c3   : > { %v2337_v34 = vmul.f32 0.1, %v2081_v31  ;;  %v2467_v39 = vsel %vm2211_vm4, %v2083_v25, %v2339_v37  ;;  %vm2273_vm7 = vcmp.gt.f32.partialorder %v2145_v33, 0.0  ;;  %v2401_v43 = vmul.f32 0.1, %v2145_v33 }
 0x1c4   : > { %v2086_v44 = vadd.f32 %v5006_v19, %v5048_v55  ;;  %v3790_v40 = vpack.c.bf16 %v2467_v39, %v2466_v8  ;;  %v2531_v47 = vsel %vm2275_vm5, %v2147_v27, %v2403_v42  ;;  %v2150_v49 = vadd.f32 %v5006_v19, %v5050_v56 }
 0x1c5   : > { %v2465_v48 = vsel %vm2209_vm6, %v2081_v31, %v2337_v34  ;;  %v3950_v50 = vpack.c.bf16 %v2531_v47, %v2530_v29  ;;  %v2529_v52 = vsel %vm2273_vm7, %v2145_v33, %v2401_v43  ;;  %v2084_v58 = vadd.f32 %v5006_v19, %v5052_v0 }
 0x1c6   : > { %v3785_v51 = vpack.c.bf16 %v2465_v48, %v2464_v30  ;;  %vm2214_vm8 = vcmp.gt.f32.partialorder %v2086_v44, 0.0  ;;  %4006 = vst [vmem:[%s4857_s24 + $0xc8] sm:$0xff] %v3790_v40   ;;  %v3945_v53 = vpack.c.bf16 %v2529_v52, %v2528_v36  ;;  %v2342_v54 = vmul.f32 0.1, %v2086_v44  ;;  %v5105_v57 = vpop.f32.mrb[60].mxu0  ;;  %v5117_v61 = vpop.f32.mrb[60].mxu1 }
 0x1c7   : > { %vm2278_vm9 = vcmp.gt.f32.partialorder %v2150_v49, 0.0  ;;  %v2406_v55 = vmul.f32 0.1, %v2150_v49  ;;  %4038 = vst [vmem:[%s4857_s24 + $0x1c8] sm:$0xff] %v3950_v50   ;;  %v2148_v56 = vadd.f32 %v5006_v19, %v5054_v1  ;;  %v2087_v59 = vadd.f32 %v5006_v19, %v5056_v5  ;;  %v5119_v62 = vpop.f32.mrb[61].mxu0  ;;  %v5127_v3 = vpop.f32.mrb[61].mxu1 }
 0x1c8   : > { %4005 = vst [vmem:[%s4857_s24 + $0xc0] sm:$0xff] %v3785_v51   ;;  %v2151_v60 = vadd.f32 %v5006_v19, %v5058_v6  ;;  %4037 = vst [vmem:[%s4857_s24 + $0x1c0] sm:$0xff] %v3945_v53   ;;  %v2470_v63 = vsel %vm2214_vm8, %v2086_v44, %v2342_v54  ;;  %v2085_v0 = vadd.f32 %v5006_v19, %v5062_v12  ;;  %v5129_v4 = vpop.f32.mrb[62].mxu0  ;;  %vm2212_vm10 = vcmp.gt.f32.partialorder %v2084_v58, 0.0  ;;  %v5131_v12 = vpop.f32.mrb[62].mxu1 }
 0x1c9   : > { %v2534_v2 = vsel %vm2278_vm9, %v2150_v49, %v2406_v55  ;;  %v2149_v1 = vadd.f32 %v5006_v19, %v5064_v13  ;;  %v2340_v5 = vmul.f32 0.1, %v2084_v58  ;;  %vm2276_vm11 = vcmp.gt.f32.partialorder %v2148_v56, 0.0  ;;  %v5133_v13 = vpop.f32.mrb[63].mxu0  ;;  %v1626_v18 = vpop.f32.mrb[63].mxu1 }
 0x1ca   : > { %v2404_v6 = vmul.f32 0.1, %v2148_v56  ;;  %vm2215_vm12 = vcmp.gt.f32.partialorder %v2087_v59, 0.0  ;;  %v2343_v7 = vmul.f32 0.1, %v2087_v59  ;;  %vm2279_vm13 = vcmp.gt.f32.partialorder %v2151_v60, 0.0 }
 0x1cb   : > { %v2407_v9 = vmul.f32 0.1, %v2151_v60  ;;  %v2468_v10 = vsel %vm2212_vm10, %v2084_v58, %v2340_v5  ;;  %vm2213_vm14 = vcmp.gt.f32.partialorder %v2085_v0, 0.0  ;;  %v2341_v14 = vmul.f32 0.1, %v2085_v0 }
 0x1cc   : > { %v2532_v11 = vsel %vm2276_vm11, %v2148_v56, %v2404_v6  ;;  %v2471_v15 = vsel %vm2215_vm12, %v2087_v59, %v2343_v7  ;;  %vm2277_vm15 = vcmp.gt.f32.partialorder %v2149_v1, 0.0  ;;  %v2405_v17 = vmul.f32 0.1, %v2149_v1 }
 0x1cd   : > { %v2535_v16 = vsel %vm2279_vm13, %v2151_v60, %v2407_v9  ;;  %v3800_v20 = vpack.c.bf16 %v2471_v15, %v2470_v63  ;;  %v2469_v22 = vsel %vm2213_vm14, %v2085_v0, %v2341_v14  ;;  %v2090_v24 = vadd.f32 %v5006_v19, %v5078_v26 }
 0x1ce   : > { %v3960_v21 = vpack.c.bf16 %v2535_v16, %v2534_v2  ;;  %v3795_v8 = vpack.c.bf16 %v2469_v22, %v2468_v10  ;;  %v2533_v23 = vsel %vm2277_vm15, %v2149_v1, %v2405_v17  ;;  %v2154_v25 = vadd.f32 %v5006_v19, %v5080_v28 }
 0x1cf   : > { %v2088_v29 = vadd.f32 %v5006_v19, %v5086_v32  ;;  %4008 = vst [vmem:[%s4857_s24 + $0xd8] sm:$0xff] %v3800_v20   ;;  %v3955_v30 = vpack.c.bf16 %v2533_v23, %v2532_v11  ;;  %vm2218_vm0 = vcmp.gt.f32.partialorder %v2090_v24, 0.0  ;;  %v2346_v27 = vmul.f32 0.1, %v2090_v24 }
 0x1d0   : > { %4040 = vst [vmem:[%s4857_s24 + $0x1d8] sm:$0xff] %v3960_v21   ;;  %v2152_v31 = vadd.f32 %v5006_v19, %v5088_v35  ;;  %4007 = vst [vmem:[%s4857_s24 + $0xd0] sm:$0xff] %v3795_v8   ;;  %vm2282_vm1 = vcmp.gt.f32.partialorder %v2154_v25, 0.0  ;;  %v2410_v26 = vmul.f32 0.1, %v2154_v25  ;;  %v2091_v28 = vadd.f32 %v5006_v19, %v5092_v38 }
 0x1d1   : > { %vm2216_vm2 = vcmp.gt.f32.partialorder %v2088_v29, 0.0  ;;  %v2344_v36 = vmul.f32 0.1, %v2088_v29  ;;  %4039 = vst [vmem:[%s4857_s24 + $0x1d0] sm:$0xff] %v3955_v30   ;;  %v2474_v37 = vsel %vm2218_vm0, %v2090_v24, %v2346_v27  ;;  %v2155_v42 = vadd.f32 %v5006_v19, %v5094_v41 }
 0x1d2   : > { %vm2280_vm3 = vcmp.gt.f32.partialorder %v2152_v31, 0.0  ;;  %v2538_v32 = vsel %vm2282_vm1, %v2154_v25, %v2410_v26  ;;  %v2408_v33 = vmul.f32 0.1, %v2152_v31  ;;  %v2089_v34 = vadd.f32 %v5006_v19, %v5098_v45 }
 0x1d3   : > { %v2472_v35 = vsel %vm2216_vm2, %v2088_v29, %v2344_v36  ;;  %vm2219_vm4 = vcmp.gt.f32.partialorder %v2091_v28, 0.0  ;;  %v2347_v39 = vmul.f32 0.1, %v2091_v28  ;;  %v2153_v43 = vadd.f32 %v5006_v19, %v5100_v46 }
 0x1d4   : > { %vm2283_vm5 = vcmp.gt.f32.partialorder %v2155_v42, 0.0  ;;  %v2411_v44 = vmul.f32 0.1, %v2155_v42  ;;  %vm2217_vm6 = vcmp.gt.f32.partialorder %v2089_v34, 0.0  ;;  %v2345_v40 = vmul.f32 0.1, %v2089_v34 }
 0x1d5   : > { %v2475_v38 = vsel %vm2219_vm4, %v2091_v28, %v2347_v39  ;;  %vm2281_vm7 = vcmp.gt.f32.partialorder %v2153_v43, 0.0  ;;  %v2409_v47 = vmul.f32 0.1, %v2153_v43  ;;  %v2094_v41 = vadd.f32 %v5006_v19, %v5105_v57 }
 0x1d6   : > { %v3810_v45 = vpack.c.bf16 %v2475_v38, %v2474_v37  ;;  %v2539_v48 = vsel %vm2283_vm5, %v2155_v42, %v2411_v44  ;;  %v2473_v49 = vsel %vm2217_vm6, %v2089_v34, %v2345_v40  ;;  %v2158_v50 = vadd.f32 %v5006_v19, %v5117_v61 }
 0x1d7   : > { %v2536_v46 = vsel %vm2280_vm3, %v2152_v31, %v2408_v33  ;;  %v3970_v51 = vpack.c.bf16 %v2539_v48, %v2538_v32  ;;  %v3805_v52 = vpack.c.bf16 %v2473_v49, %v2472_v35  ;;  %v2537_v53 = vsel %vm2281_vm7, %v2153_v43, %v2409_v47 }
 0x1d8   : > { %4010 = vst [vmem:[%s4857_s24 + $0xe8] sm:$0xff] %v3810_v45   ;;  %v3965_v54 = vpack.c.bf16 %v2537_v53, %v2536_v46  ;;  %vm2222_vm8 = vcmp.gt.f32.partialorder %v2094_v41, 0.0  ;;  %v2350_v55 = vmul.f32 0.1, %v2094_v41  ;;  %v2414_v58 = vmul.f32 0.1, %v2158_v50 }
 0x1d9   : > { %4042 = vst [vmem:[%s4857_s24 + $0x1e8] sm:$0xff] %v3970_v51   ;;  %4009 = vst [vmem:[%s4857_s24 + $0xe0] sm:$0xff] %v3805_v52   ;;  %v2092_v57 = vadd.f32 %v5006_v19, %v5119_v62  ;;  %v2156_v56 = vadd.f32 %v5006_v19, %v5127_v3  ;;  %v2095_v59 = vadd.f32 %v5006_v19, %v5129_v4  ;;  %vm2286_vm9 = vcmp.gt.f32.partialorder %v2158_v50, 0.0 }
 0x1da   : > { %v2159_v60 = vadd.f32 %v5006_v19, %v5131_v12  ;;  %4041 = vst [vmem:[%s4857_s24 + $0x1e0] sm:$0xff] %v3965_v54   ;;  %v2093_v61 = vadd.f32 %v5006_v19, %v5133_v13  ;;  %v2157_v63 = vadd.f32 %v5006_v19, %v1626_v18  ;;  %v2478_v2 = vsel %vm2222_vm8, %v2094_v41, %v2350_v55 }
 0x1db   : > { %vm2220_vm10 = vcmp.gt.f32.partialorder %v2092_v57, 0.0  ;;  %v2348_v62 = vmul.f32 0.1, %v2092_v57  ;;  %v2412_v0 = vmul.f32 0.1, %v2156_v56  ;;  %vm2223_vm11 = vcmp.gt.f32.partialorder %v2095_v59, 0.0 }
 0x1dc   : > { %v2351_v1 = vmul.f32 0.1, %v2095_v59  ;;  %vm2287_vm12 = vcmp.gt.f32.partialorder %v2159_v60, 0.0  ;;  %v2415_v3 = vmul.f32 0.1, %v2159_v60  ;;  %v2542_v4 = vsel %vm2286_vm9, %v2158_v50, %v2414_v58 }
 0x1dd   : > { %vm2284_vm13 = vcmp.gt.f32.partialorder %v2156_v56, 0.0  ;;  %vm2221_vm14 = vcmp.gt.f32.partialorder %v2093_v61, 0.0  ;;  %v2349_v5 = vmul.f32 0.1, %v2093_v61  ;;  %vm2285_vm15 = vcmp.gt.f32.partialorder %v2157_v63, 0.0 }
 0x1de   : > { %v2479_v6 = vsel %vm2223_vm11, %v2095_v59, %v2351_v1  ;;  %v2543_v7 = vsel %vm2287_vm12, %v2159_v60, %v2415_v3  ;;  %v2413_v19 = vmul.f32 0.1, %v2157_v63  ;;  %v2476_v9 = vsel %vm2220_vm10, %v2092_v57, %v2348_v62 }
 0x1df   : > { %v3820_v10 = vpack.c.bf16 %v2479_v6, %v2478_v2  ;;  %v3980_v11 = vpack.c.bf16 %v2543_v7, %v2542_v4  ;;  %v2477_v14 = vsel %vm2221_vm14, %v2093_v61, %v2349_v5  ;;  %v2540_v12 = vsel %vm2284_vm13, %v2156_v56, %v2412_v0 }
 0x1e0   : > { %v3815_v13 = vpack.c.bf16 %v2477_v14, %v2476_v9  ;;  %v2541_v15 = vsel %vm2285_vm15, %v2157_v63, %v2413_v19 }
 0x1e1   : > { %4012 = vst [vmem:[%s4857_s24 + $0xf8] sm:$0xff] %v3820_v10   ;;  %4044 = vst [vmem:[%s4857_s24 + $0x1f8] sm:$0xff] %v3980_v11   ;;  %v3975_v16 = vpack.c.bf16 %v2541_v15, %v2540_v12 }
 0x1e2   : > { %4011 = vst [vmem:[%s4857_s24 + $0xf0] sm:$0xff] %v3815_v13  }
 0x1e3   : > { %4043 = vst [vmem:[%s4857_s24 + $0x1f0] sm:$0xff] %v3975_v16  }
 0x1e4   : > { %4498 = shalt.err (!%p4495_p5)
}
 0x1e5   : > { %s4499_s7 = scalar_lea.hbm %s5181_s8, 8192  ;;  %s4503_s22 = scalar_lea.hbm %s5239_s3, 16384 }
 0x1e6   : > { %p4500_p9 = scmp.ne.s32.totalorder %s5181_s8, %s4499_s7  ;;  %p4504_p3 = scmp.lt.u32.totalorder %s5181_s8, %s5239_s3 }
 0x1e7   : > { %p4505_p7 = scmp.lt.u32.totalorder %s4503_s22, %s4499_s7  ;;  %p4507_p4 = scmp.lt.u32.totalorder %s4499_s7, %s5181_s8 }
 0x1e8   : > { %p4501_p1 = pnand %p4500_p9, %p4699_p10 }
 0x1e9   : > { %p4506_p13 = por %p4505_p7, %p4504_p3 }
 0x1ea   : > { %p4502_p2 = pneg %p4501_p1 }
 0x1eb   : > { %p4508_p6 = por %p4507_p4, %p4506_p13 }
 0x1ed   : > { %p4509_p8 = pnand %p4508_p6, %p4502_p2 }
 0x1ef   : > { %4512 = shalt.err (!%p4509_p8)
}
 0x1f0   : > { %s4578_s11 = smov 64   ;;  %s4579_s9 = smov 4  }
 0x1f1   : > { %4283 = dma.vmem_to_hbm [thread:$0]  (%p4699_p10), %s5183_s18, 8192, %s5181_s8, %s3185_s26, %s4578_s11, %s4578_s11, %s4579_s9  }
 0x1f2 PF: > { %s3214_s25 = sand.u32 1, %s4551_s12   ;;  %p5257_p12 = scmp.ne.s32.totalorder %s5247_s23, 0 }
 0x1f3   : > { %p5258_p11 = scmp.ge.s32.totalorder %s4571_s17, 2  ;;  %s3215_s15 = scalar_lea.sflag [#allocation5], %s3214_s25 }
 0x1f5   : > { %p4294_p0 = pnand %p5258_p11, %p5257_p12 }
 0x1f7   : > { %4546 = dma.done.wait (!%p4294_p0), %s3215_s15, 8192  }
 0x1f8   : > { %4548 = vsyncadd (!%p4294_p0), %s3215_s15, 4294959104  ;;  %s20_s17 = sadd.s32 1, %s4571_s17   ;;  %s5259_s12 = smov %s4555_s13 }
 0x1f9   : > { %p17_p5 = scmp.ge.s32.totalorder %s20_s17, 4   ;;  %s5260_s13 = smov %s4559_s14 }
 0x1fa   : > { %s5261_s14 = smov %s4708_s5  ;;  %s5262_s15 = smov %s4567_s16 }
 0x1fb   : > { %s5263_s16 = smov %s5265_s28  ;;  %19 = sbr.rel (!%p17_p5) target bundleno = 7 (0x7), region = 93 }
 0x202   :  { %3220 = vsyncpa [#allocation4], 1 }
 0x203   :  { %3222 = vsyncpa [#allocation4 + $0x1], 1 }
 0x204   :  { %3223 = vsyncpa [#allocation7], 1 }
 0x205   :  { %3224 = vsyncpa [#allocation5], 1 }
 0x206   :  { %3226 = vsyncpa [#allocation5 + $0x1], 1 }

</bundles_post_ra>
